<compile_context>
chip_gen: v7x
topology: tpu7x:2x2x1
jax: 0.10.0
libtpu: 0.0.40
codegen_flags: <defaults>
</compile_context>

<pallas_src>
import functools

import jax
import jax.numpy as jnp
from jax.experimental import pallas as pl
from jax.experimental.pallas import tpu as pltpu

LANE = 128       # pad every feature width to a multiple of this (lane-dense stores / MXU)
NODE_PAD = 128   # pad node count to a multiple of this (clean tiling, no full-extent fallback)


def _round_up(x, m):
    return ((x + m - 1) // m) * m


def _pick_tile(n, candidates):
    for c in candidates:
        if c <= n and n % c == 0:
            return c
    return n  # n is always a multiple of 128 here, so this never exceeds 128-alignment


def _vmem_capacity_bytes():
    try:
        return int(pltpu.get_tpu_info().vmem_capacity_bytes)
    except Exception:
        return 64 << 20  # conservative fallback (v7x per-core VMEM)


# ----------------------------------------------------------------------------
# Fused whole-graph kernel (small N): all layers in one pallas_call.
# ----------------------------------------------------------------------------
def fused_sage_kernel(a_ref, invdeg_ref, x_ref, *refs, n_layers):
    """refs = [W_self_0, W_neigh_0, b_0, ..., W_self_{L-1}, W_neigh_{L-1}, b_{L-1}, out]."""
    o_ref = refs[-1]
    layer_refs = refs[:-1]

    # int8 {0,1} adjacency -> bf16 once, reused by every layer (exact for 0/1 values).
    a = a_ref[...].astype(jnp.float32).astype(jnp.bfloat16)      # (Np, Np)
    inv_deg = invdeg_ref[...]                                     # (Np, 1) f32
    h = x_ref[...]                                                # (Np, Din) bf16

    out = None
    for l in range(n_layers):
        ws = layer_refs[3 * l][...]       # (Din_l, Dout_l) bf16
        wn = layer_refs[3 * l + 1][...]   # (Din_l, Dout_l) bf16
        b = layer_refs[3 * l + 2][...]    # (1, Dout_l) f32
        zs = jnp.dot(h, ws, preferred_element_type=jnp.float32)             # self proj
        zn = jnp.dot(h, wn, preferred_element_type=jnp.float32).astype(jnp.bfloat16)
        # Reassociated mean aggregation: (A @ (H W_neigh)) scaled by f32 1/deg per row.
        agg = jnp.dot(a, zn, preferred_element_type=jnp.float32)
        out = zs + inv_deg * agg + b
        if l != n_layers - 1:
            out = jnp.maximum(out, 0.0)           # activation
            h = out.astype(jnp.bfloat16)          # next layer's input (stays in VMEM)
    o_ref[...] = out.astype(o_ref.dtype)


def sage_forward_fused(a_i8, inv_deg, x_p, params_p, *, vmem_limit):
    np_, din = x_p.shape
    n_layers = len(params_p)
    dout_final = params_p[-1][0].shape[1]

    flat_inputs = []
    in_specs = [
        pl.BlockSpec((np_, np_), lambda i: (0, 0)),   # A (int8 0/1)
        pl.BlockSpec((np_, 1), lambda i: (0, 0)),     # 1/deg (f32)
        pl.BlockSpec((np_, din), lambda i: (0, 0)),   # X (bf16)
    ]
    for (ws, wn, b) in params_p:
        di, do = ws.shape
        flat_inputs += [ws, wn, b]
        in_specs += [
            pl.BlockSpec((di, do), lambda i: (0, 0)),
            pl.BlockSpec((di, do), lambda i: (0, 0)),
            pl.BlockSpec((1, do), lambda i: (0, 0)),
        ]

    kernel = functools.partial(fused_sage_kernel, n_layers=n_layers)
    return pl.pallas_call(
        kernel,
        out_shape=jax.ShapeDtypeStruct((np_, dout_final), jnp.float32),
        grid_spec=pltpu.PrefetchScalarGridSpec(
            num_scalar_prefetch=0,
            grid=(1,),
            in_specs=in_specs,
            out_specs=pl.BlockSpec((np_, dout_final), lambda i: (0, 0)),
        ),
        compiler_params=pltpu.CompilerParams(
            dimension_semantics=("arbitrary",),
            vmem_limit_bytes=vmem_limit),
    )(a_i8, inv_deg, x_p, *flat_inputs)


# ----------------------------------------------------------------------------
# Scalable tiled path (large N): per-layer projection kernel + K-tiled aggregation
# with Z_self + bias folded into the aggregation epilogue (no zs HBM round-trip).
# ----------------------------------------------------------------------------
def project_kernel(h_ref, wn_ref, zn_ref):
    """Z_neigh = H W_neigh (bf16) for a node tile."""
    zn_ref[...] = jnp.dot(h_ref[...], wn_ref[...],
                          preferred_element_type=jnp.float32).astype(zn_ref.dtype)


def sage_agg_kernel(a_ref, zn_ref, h_ref, ws_ref, b_ref, invdeg_ref, o_ref, acc_ref,
                    *, relu):
    """out_tile = H_tile@W_self + b + inv_deg * sum_k A[i, k-tile] @ Z_neigh[k-tile]."""
    k = pl.program_id(1)

    @pl.when(k == 0)
    def _():
        acc_ref[...] = jnp.zeros_like(acc_ref)

    # int8 {0,1} tile -> bf16 (exact), accumulate neighbor sum in f32.
    a = a_ref[...].astype(jnp.float32).astype(jnp.bfloat16)
    acc_ref[...] += jnp.dot(a, zn_ref[...], preferred_element_type=jnp.float32)

    @pl.when(k == pl.num_programs(1) - 1)
    def _():
        zs = jnp.dot(h_ref[...], ws_ref[...],
                     preferred_element_type=jnp.float32) + b_ref[...]
        out = zs + invdeg_ref[...] * acc_ref[...]
        if relu:
            out = jnp.maximum(out, 0.0)
        o_ref[...] = out.astype(o_ref.dtype)


def sage_conv_tiled(a_i8, inv_deg, h_bf16, w_self, w_neigh, bias, *, relu, out_dtype,
                    tm, tk):
    np_, din = h_bf16.shape
    dout = w_self.shape[1]

    # ---- projection (reassociation): Z_neigh over node tiles ----
    zn = pl.pallas_call(
        project_kernel,
        out_shape=jax.ShapeDtypeStruct((np_, dout), jnp.bfloat16),
        grid_spec=pltpu.PrefetchScalarGridSpec(
            num_scalar_prefetch=0,
            grid=(np_ // tm,),
            in_specs=[
                pl.BlockSpec((tm, din), lambda i: (i, 0)),
                pl.BlockSpec((din, dout), lambda i: (0, 0)),
            ],
            out_specs=pl.BlockSpec((tm, dout), lambda i: (i, 0)),
        ),
        compiler_params=pltpu.CompilerParams(dimension_semantics=("parallel",)),
    )(h_bf16, w_neigh)

    # ---- aggregation + self path: node tiles (parallel) x neighbor K-tiles (arbitrary) ----
    kernel = functools.partial(sage_agg_kernel, relu=relu)
    return pl.pallas_call(
        kernel,
        out_shape=jax.ShapeDtypeStruct((np_, dout), out_dtype),
        grid_spec=pltpu.PrefetchScalarGridSpec(
            num_scalar_prefetch=0,
            grid=(np_ // tm, np_ // tk),
            in_specs=[
                pl.BlockSpec((tm, tk), lambda i, k: (i, k)),      # A int8 tile
                pl.BlockSpec((tk, dout), lambda i, k: (k, 0)),    # Z_neigh K-tile
                pl.BlockSpec((tm, din), lambda i, k: (i, 0)),     # H node tile (for zs)
                pl.BlockSpec((din, dout), lambda i, k: (0, 0)),   # W_self (resident)
                pl.BlockSpec((1, dout), lambda i, k: (0, 0)),     # bias (resident)
                pl.BlockSpec((tm, 1), lambda i, k: (i, 0)),       # 1/deg node tile
            ],
            out_specs=pl.BlockSpec((tm, dout), lambda i, k: (i, 0)),
            scratch_shapes=[pltpu.VMEM((tm, dout), jnp.float32)],
        ),
        compiler_params=pltpu.CompilerParams(
            dimension_semantics=("parallel", "arbitrary")),
    )(a_i8, zn, h_bf16, w_self, bias, inv_deg)


def _default_tiles(np_, vmem_cap):
    if vmem_cap <= (64 << 20):        # v7x-class: half VMEM -> smaller tiles
        tm = _pick_tile(np_, (256, 128))
        tk = _pick_tile(np_, (512, 256, 128))
    else:                             # v5e / v6e: amortize per-step overhead, bigger DMAs
        tm = _pick_tile(np_, (512, 256, 128))
        tk = _pick_tile(np_, (1024, 512, 256, 128))
    return tm, tk


def sage_forward_tiled(a_i8, inv_deg, x_p, params_p, *, tm=None, tk=None):
    np_ = x_p.shape[0]
    dtm, dtk = _default_tiles(np_, _vmem_capacity_bytes())
    tm = tm or dtm
    tk = tk or dtk
    h = x_p
    n_layers = len(params_p)
    for l, (w_self, w_neigh, b) in enumerate(params_p):
        last = (l == n_layers - 1)
        h = sage_conv_tiled(a_i8, inv_deg, h, w_self, w_neigh, b,
                            relu=not last,
                            out_dtype=jnp.float32 if last else jnp.bfloat16,
                            tm=tm, tk=tk)
    return h


# ----------------------------------------------------------------------------
# Padding / dispatch / parameter init / pure-JAX reference
# ----------------------------------------------------------------------------
def _prepare_inputs(adj, x, params):
    """Zero-pad node count to NODE_PAD and feature widths to LANE multiples (exact)."""
    n, din = x.shape
    np_ = _round_up(max(n, NODE_PAD), NODE_PAD)
    dims = [din] + [ws.shape[1] for (ws, _, _) in params]
    dims_pad = [_round_up(max(d, LANE), LANE) for d in dims]

    a_i8 = jnp.zeros((np_, np_), jnp.int8).at[:n, :n].set(adj.astype(jnp.int8))
    deg = adj.astype(jnp.float32).sum(axis=1, keepdims=True)
    inv_deg = jnp.where(deg > 0, 1.0 / jnp.maximum(deg, 1.0), 0.0)  # isolated -> 0
    inv_deg_p = jnp.zeros((np_, 1), jnp.float32).at[:n].set(inv_deg)

    x_p = jnp.zeros((np_, dims_pad[0]), jnp.bfloat16).at[:n, :din].set(
        x.astype(jnp.bfloat16))

    params_p = []
    for l, (ws, wn, b) in enumerate(params):
        di, do = ws.shape
        dip, dop = dims_pad[l], dims_pad[l + 1]
        ws_p = jnp.zeros((dip, dop), jnp.bfloat16).at[:di, :do].set(ws.astype(jnp.bfloat16))
        wn_p = jnp.zeros((dip, dop), jnp.bfloat16).at[:di, :do].set(wn.astype(jnp.bfloat16))
        b_p = jnp.zeros((1, dop), jnp.float32).at[:, :do].set(b.astype(jnp.float32))
        params_p.append((ws_p, wn_p, b_p))
    return a_i8, inv_deg_p, x_p, params_p, n, dims[-1]


def _fused_vmem_estimate(np_, dims_pad):
    b = 3 * np_ * np_                      # int8 A buffer + in-kernel bf16 copy
    b += np_ * 4                           # 1/deg
    b += np_ * dims_pad[0] * 2             # X (bf16)
    for l in range(len(dims_pad) - 1):
        di, do = dims_pad[l], dims_pad[l + 1]
        b += 2 * di * do * 2 + do * 4      # weights + bias
        b += np_ * do * 12                 # live zs(f32) + zn(bf16) + out(f32) intermediates
    b += np_ * dims_pad[-1] * 4 * 2        # output block
    return b


def sage_forward(adj, x, params, *, force_tiled=False, tm=None, tk=None):
    """adj: dense 0/1 adjacency [N, N] (row i = incoming edges of node i)."""
    a_i8, inv_deg, x_p, params_p, n, n_classes = _prepare_inputs(adj, x, params)
    np_ = x_p.shape[0]
    dims_pad = [x_p.shape[1]] + [p[0].shape[1] for p in params_p]

    vmem_cap = _vmem_capacity_bytes()
    est = _fused_vmem_estimate(np_, dims_pad)
    if (not force_tiled) and est <= int(0.4 * vmem_cap):
        vmem_limit = min(int(0.8 * vmem_cap), 100 << 20)
        out = sage_forward_fused(a_i8, inv_deg, x_p, params_p, vmem_limit=vmem_limit)
    else:
        out = sage_forward_tiled(a_i8, inv_deg, x_p, params_p, tm=tm, tk=tk)
    return out[:n, :n_classes]


def init_params(key, in_feats, n_hidden, n_classes, n_layers):
    """Deterministic init matching DGL SAGEConv param shapes (fc_self, fc_neigh, bias).

    Bias is randomized (instead of DGL's zero init) so the correctness check is meaningful.
    """
    dims = [in_feats] + [n_hidden] * (n_layers - 1) + [n_classes]
    params = []
    for l in range(n_layers):
        key, k1, k2, k3 = jax.random.split(key, 4)
        din, dout = dims[l], dims[l + 1]
        scale = 1.0 / jnp.sqrt(din).astype(jnp.float32)
        w_self = jax.random.uniform(k1, (din, dout), jnp.float32, -scale, scale)
        w_neigh = jax.random.uniform(k2, (din, dout), jnp.float32, -scale, scale)
        b = jax.random.uniform(k3, (1, dout), jnp.float32, -scale, scale)
        params.append((w_self, w_neigh, b))
    return params


def reference_forward(adj, x, params):
    """Pure-JAX reference mimicking the kernels' bf16-input / f32-accumulate numerics."""
    f32 = jnp.float32
    a = adj.astype(f32)                                    # 0/1 exact
    deg = a.sum(axis=1, keepdims=True)
    inv_deg = jnp.where(deg > 0, 1.0 / jnp.maximum(deg, 1.0), 0.0)
    h = x.astype(jnp.bfloat16).astype(f32)
    n_layers = len(params)
    out = None
    for l, (ws, wn, b) in enumerate(params):
        wsb = ws.astype(jnp.bfloat16).astype(f32)
        wnb = wn.astype(jnp.bfloat16).astype(f32)
        zn = (h @ wnb).astype(jnp.bfloat16).astype(f32)
        out = h @ wsb + inv_deg * (a @ zn) + b.astype(f32)
        if l != n_layers - 1:
            out = jnp.maximum(out, 0.0)
            h = out.astype(jnp.bfloat16).astype(f32)
    return out


if __name__ == "__main__":
    # small shapes: 64 nodes, in_feats=32, n_hidden=32, n_classes=8, n_layers=3
    N, in_feats, n_hidden, n_classes, n_layers = 64, 32, 32, 8, 3

    key = jax.random.PRNGKey(0)
    kx, ka, kp, k2x, k2a = jax.random.split(key, 5)

    # node features + random directed graph as a dense 0/1 adjacency
    x = jax.random.normal(kx, (N, in_feats), dtype=jnp.float32)
    adj = (jax.random.uniform(ka, (N, N)) < 0.10).astype(jnp.float32)

    params = init_params(kp, in_feats, n_hidden, n_classes, n_layers)
    ref = reference_forward(adj, x, params)

    # 1) dispatcher path (routes to the fused single-pallas_call kernel at this size)
    out_fused = jax.block_until_ready(sage_forward(adj, x, params))
    assert out_fused.shape == (N, n_classes) and out_fused.dtype == jnp.float32
    err_fused = float(jnp.max(jnp.abs(out_fused - ref)))
    assert err_fused < 2e-2, f"fused path mismatch: {err_fused}"

    # 2) scalable tiled path on the same graph
    out_tiled = jax.block_until_ready(sage_forward(adj, x, params, force_tiled=True))
    err_tiled = float(jnp.max(jnp.abs(out_tiled - ref)))
    assert err_tiled < 2e-2, f"tiled path mismatch: {err_tiled}"

    # 3) tiled path with a multi-tile grid (exercises parallel M tiles + K-reduction accum)
    N2 = 256
    x2 = jax.random.normal(k2x, (N2, in_feats), dtype=jnp.float32)
    adj2 = (jax.random.uniform(k2a, (N2, N2)) < 0.05).astype(jnp.float32)
    ref2 = reference_forward(adj2, x2, params)
    out2 = jax.block_until_ready(
        sage_forward(adj2, x2, params, force_tiled=True, tm=128, tk=128))
    err2 = float(jnp.max(jnp.abs(out2 - ref2)))
    assert out2.shape == (N2, n_classes) and err2 < 2e-2, f"multi-tile mismatch: {err2}"

    print("KERNEL_OK")
</pallas_src>

<mosaic_0001>
module attributes {stable_mosaic.version = 11 : i64} {
  func.func @fused_sage_kernel(%arg0: i32, %arg1: memref<128x128xi8, #tpu.memory_space<vmem>>, %arg2: memref<128x1xf32, #tpu.memory_space<vmem>>, %arg3: memref<128x128xbf16, #tpu.memory_space<vmem>>, %arg4: memref<128x128xbf16, #tpu.memory_space<vmem>>, %arg5: memref<128x128xbf16, #tpu.memory_space<vmem>>, %arg6: memref<1x128xf32, #tpu.memory_space<vmem>>, %arg7: memref<128x128xbf16, #tpu.memory_space<vmem>>, %arg8: memref<128x128xbf16, #tpu.memory_space<vmem>>, %arg9: memref<1x128xf32, #tpu.memory_space<vmem>>, %arg10: memref<128x128xbf16, #tpu.memory_space<vmem>>, %arg11: memref<128x128xbf16, #tpu.memory_space<vmem>>, %arg12: memref<1x128xf32, #tpu.memory_space<vmem>>, %arg13: memref<128x128xf32, #tpu.memory_space<vmem>>) attributes {dimension_semantics = [#tpu.dimension_semantics<arbitrary>], iteration_bounds = array<i64: 1>, scalar_prefetch = 0 : i64, scratch_operands = 0 : i64, tpu.core_type = #tpu.core_type<tc>, window_params = [{pipeline_mode = #tpu.pipeline_mode<synchronous>, transform_indices = @transform_0, window_bounds = array<i64: 128, 128>}, {pipeline_mode = #tpu.pipeline_mode<synchronous>, transform_indices = @transform_1, window_bounds = array<i64: 128, 1>}, {pipeline_mode = #tpu.pipeline_mode<synchronous>, transform_indices = @transform_2, window_bounds = array<i64: 128, 128>}, {pipeline_mode = #tpu.pipeline_mode<synchronous>, transform_indices = @transform_3, window_bounds = array<i64: 128, 128>}, {pipeline_mode = #tpu.pipeline_mode<synchronous>, transform_indices = @transform_4, window_bounds = array<i64: 128, 128>}, {pipeline_mode = #tpu.pipeline_mode<synchronous>, transform_indices = @transform_5, window_bounds = array<i64: 1, 128>}, {pipeline_mode = #tpu.pipeline_mode<synchronous>, transform_indices = @transform_6, window_bounds = array<i64: 128, 128>}, {pipeline_mode = #tpu.pipeline_mode<synchronous>, transform_indices = @transform_7, window_bounds = array<i64: 128, 128>}, {pipeline_mode = #tpu.pipeline_mode<synchronous>, transform_indices = @transform_8, window_bounds = array<i64: 1, 128>}, {pipeline_mode = #tpu.pipeline_mode<synchronous>, transform_indices = @transform_9, window_bounds = array<i64: 128, 128>}, {pipeline_mode = #tpu.pipeline_mode<synchronous>, transform_indices = @transform_10, window_bounds = array<i64: 128, 128>}, {pipeline_mode = #tpu.pipeline_mode<synchronous>, transform_indices = @transform_11, window_bounds = array<i64: 1, 128>}, {pipeline_mode = #tpu.pipeline_mode<synchronous>, transform_indices = @transform_12, window_bounds = array<i64: 128, 128>}]} {
    %c0 = arith.constant 0 : index
    %c0_0 = arith.constant 0 : index
    %0 = vector.load %arg1[%c0, %c0_0] : memref<128x128xi8, #tpu.memory_space<vmem>>, vector<128x128xi8>
    %1 = arith.sitofp %0 : vector<128x128xi8> to vector<128x128xf32>
    %2 = arith.truncf %1 : vector<128x128xf32> to vector<128x128xbf16>
    %c0_1 = arith.constant 0 : index
    %c0_2 = arith.constant 0 : index
    %3 = vector.load %arg2[%c0_1, %c0_2] : memref<128x1xf32, #tpu.memory_space<vmem>>, vector<128x1xf32>
    %c0_3 = arith.constant 0 : index
    %c0_4 = arith.constant 0 : index
    %4 = vector.load %arg3[%c0_3, %c0_4] : memref<128x128xbf16, #tpu.memory_space<vmem>>, vector<128x128xbf16>
    %c0_5 = arith.constant 0 : index
    %c0_6 = arith.constant 0 : index
    %5 = vector.load %arg4[%c0_5, %c0_6] : memref<128x128xbf16, #tpu.memory_space<vmem>>, vector<128x128xbf16>
    %c0_7 = arith.constant 0 : index
    %c0_8 = arith.constant 0 : index
    %6 = vector.load %arg5[%c0_7, %c0_8] : memref<128x128xbf16, #tpu.memory_space<vmem>>, vector<128x128xbf16>
    %c0_9 = arith.constant 0 : index
    %c0_10 = arith.constant 0 : index
    %7 = vector.load %arg6[%c0_9, %c0_10] : memref<1x128xf32, #tpu.memory_space<vmem>>, vector<1x128xf32>
    %cst = arith.constant dense<0.000000e+00> : vector<128x128xf32>
    %8 = tpu.matmul %4, %5, %cst {dimension_numbers = #tpu.dot_dimension_numbers<[1], [0], [0], [1], [0, 0, 1, 1], [], []>} : vector<128x128xbf16>, vector<128x128xbf16>, vector<128x128xf32> -> vector<128x128xf32>
    %cst_11 = arith.constant dense<0.000000e+00> : vector<128x128xf32>
    %9 = tpu.matmul %4, %6, %cst_11 {dimension_numbers = #tpu.dot_dimension_numbers<[1], [0], [0], [1], [0, 0, 1, 1], [], []>} : vector<128x128xbf16>, vector<128x128xbf16>, vector<128x128xf32> -> vector<128x128xf32>
    %10 = arith.truncf %9 : vector<128x128xf32> to vector<128x128xbf16>
    %cst_12 = arith.constant dense<0.000000e+00> : vector<128x128xf32>
    %11 = tpu.matmul %2, %10, %cst_12 {dimension_numbers = #tpu.dot_dimension_numbers<[1], [0], [0], [1], [0, 0, 1, 1], [], []>} : vector<128x128xbf16>, vector<128x128xbf16>, vector<128x128xf32> -> vector<128x128xf32>
    %12 = vector.broadcast %3 : vector<128x1xf32> to vector<128x128xf32>
    %13 = arith.mulf %12, %11 : vector<128x128xf32>
    %14 = arith.addf %8, %13 : vector<128x128xf32>
    %15 = vector.broadcast %7 : vector<1x128xf32> to vector<128x128xf32>
    %16 = arith.addf %14, %15 : vector<128x128xf32>
    %cst_13 = arith.constant 0.000000e+00 : f32
    %17 = vector.broadcast %cst_13 : f32 to vector<128x128xf32>
    %18 = arith.maximumf %16, %17 : vector<128x128xf32>
    %19 = arith.truncf %18 : vector<128x128xf32> to vector<128x128xbf16>
    %c0_14 = arith.constant 0 : index
    %c0_15 = arith.constant 0 : index
    %20 = vector.load %arg7[%c0_14, %c0_15] : memref<128x128xbf16, #tpu.memory_space<vmem>>, vector<128x128xbf16>
    %c0_16 = arith.constant 0 : index
    %c0_17 = arith.constant 0 : index
    %21 = vector.load %arg8[%c0_16, %c0_17] : memref<128x128xbf16, #tpu.memory_space<vmem>>, vector<128x128xbf16>
    %c0_18 = arith.constant 0 : index
    %c0_19 = arith.constant 0 : index
    %22 = vector.load %arg9[%c0_18, %c0_19] : memref<1x128xf32, #tpu.memory_space<vmem>>, vector<1x128xf32>
    %cst_20 = arith.constant dense<0.000000e+00> : vector<128x128xf32>
    %23 = tpu.matmul %19, %20, %cst_20 {dimension_numbers = #tpu.dot_dimension_numbers<[1], [0], [0], [1], [0, 0, 1, 1], [], []>} : vector<128x128xbf16>, vector<128x128xbf16>, vector<128x128xf32> -> vector<128x128xf32>
    %cst_21 = arith.constant dense<0.000000e+00> : vector<128x128xf32>
    %24 = tpu.matmul %19, %21, %cst_21 {dimension_numbers = #tpu.dot_dimension_numbers<[1], [0], [0], [1], [0, 0, 1, 1], [], []>} : vector<128x128xbf16>, vector<128x128xbf16>, vector<128x128xf32> -> vector<128x128xf32>
    %25 = arith.truncf %24 : vector<128x128xf32> to vector<128x128xbf16>
    %cst_22 = arith.constant dense<0.000000e+00> : vector<128x128xf32>
    %26 = tpu.matmul %2, %25, %cst_22 {dimension_numbers = #tpu.dot_dimension_numbers<[1], [0], [0], [1], [0, 0, 1, 1], [], []>} : vector<128x128xbf16>, vector<128x128xbf16>, vector<128x128xf32> -> vector<128x128xf32>
    %27 = vector.broadcast %3 : vector<128x1xf32> to vector<128x128xf32>
    %28 = arith.mulf %27, %26 : vector<128x128xf32>
    %29 = arith.addf %23, %28 : vector<128x128xf32>
    %30 = vector.broadcast %22 : vector<1x128xf32> to vector<128x128xf32>
    %31 = arith.addf %29, %30 : vector<128x128xf32>
    %cst_23 = arith.constant 0.000000e+00 : f32
    %32 = vector.broadcast %cst_23 : f32 to vector<128x128xf32>
    %33 = arith.maximumf %31, %32 : vector<128x128xf32>
    %34 = arith.truncf %33 : vector<128x128xf32> to vector<128x128xbf16>
    %c0_24 = arith.constant 0 : index
    %c0_25 = arith.constant 0 : index
    %35 = vector.load %arg10[%c0_24, %c0_25] : memref<128x128xbf16, #tpu.memory_space<vmem>>, vector<128x128xbf16>
    %c0_26 = arith.constant 0 : index
    %c0_27 = arith.constant 0 : index
    %36 = vector.load %arg11[%c0_26, %c0_27] : memref<128x128xbf16, #tpu.memory_space<vmem>>, vector<128x128xbf16>
    %c0_28 = arith.constant 0 : index
    %c0_29 = arith.constant 0 : index
    %37 = vector.load %arg12[%c0_28, %c0_29] : memref<1x128xf32, #tpu.memory_space<vmem>>, vector<1x128xf32>
    %cst_30 = arith.constant dense<0.000000e+00> : vector<128x128xf32>
    %38 = tpu.matmul %34, %35, %cst_30 {dimension_numbers = #tpu.dot_dimension_numbers<[1], [0], [0], [1], [0, 0, 1, 1], [], []>} : vector<128x128xbf16>, vector<128x128xbf16>, vector<128x128xf32> -> vector<128x128xf32>
    %cst_31 = arith.constant dense<0.000000e+00> : vector<128x128xf32>
    %39 = tpu.matmul %34, %36, %cst_31 {dimension_numbers = #tpu.dot_dimension_numbers<[1], [0], [0], [1], [0, 0, 1, 1], [], []>} : vector<128x128xbf16>, vector<128x128xbf16>, vector<128x128xf32> -> vector<128x128xf32>
    %40 = arith.truncf %39 : vector<128x128xf32> to vector<128x128xbf16>
    %cst_32 = arith.constant dense<0.000000e+00> : vector<128x128xf32>
    %41 = tpu.matmul %2, %40, %cst_32 {dimension_numbers = #tpu.dot_dimension_numbers<[1], [0], [0], [1], [0, 0, 1, 1], [], []>} : vector<128x128xbf16>, vector<128x128xbf16>, vector<128x128xf32> -> vector<128x128xf32>
    %42 = vector.broadcast %3 : vector<128x1xf32> to vector<128x128xf32>
    %43 = arith.mulf %42, %41 : vector<128x128xf32>
    %44 = arith.addf %38, %43 : vector<128x128xf32>
    %45 = vector.broadcast %37 : vector<1x128xf32> to vector<128x128xf32>
    %46 = arith.addf %44, %45 : vector<128x128xf32>
    %c0_33 = arith.constant 0 : index
    %c0_34 = arith.constant 0 : index
    %47 = vector.load %arg13[%c0_33, %c0_34] : memref<128x128xf32, #tpu.memory_space<vmem>>, vector<128x128xf32>
    tpu.vector_store %arg13[%c0_33, %c0_34], %46 {strides = array<i32>} : memref<128x128xf32, #tpu.memory_space<vmem>>, vector<128x128xf32>,
    return
  }
  func.func @transform_0(%arg0: i32) -> (i32, i32) {
    %c0_i32 = arith.constant 0 : i32
    %c0_i32_0 = arith.constant 0 : i32
    %c0_i32_1 = arith.constant 0 : i32
    return %c0_i32, %c0_i32_0 : i32, i32
  }
  func.func @transform_1(%arg0: i32) -> (i32, i32) {
    %c0_i32 = arith.constant 0 : i32
    %c0_i32_0 = arith.constant 0 : i32
    %c0_i32_1 = arith.constant 0 : i32
    return %c0_i32, %c0_i32_0 : i32, i32
  }
  func.func @transform_2(%arg0: i32) -> (i32, i32) {
    %c0_i32 = arith.constant 0 : i32
    %c0_i32_0 = arith.constant 0 : i32
    %c0_i32_1 = arith.constant 0 : i32
    return %c0_i32, %c0_i32_0 : i32, i32
  }
  func.func @transform_3(%arg0: i32) -> (i32, i32) {
    %c0_i32 = arith.constant 0 : i32
    %c0_i32_0 = arith.constant 0 : i32
    %c0_i32_1 = arith.constant 0 : i32
    return %c0_i32, %c0_i32_0 : i32, i32
  }
  func.func @transform_4(%arg0: i32) -> (i32, i32) {
    %c0_i32 = arith.constant 0 : i32
    %c0_i32_0 = arith.constant 0 : i32
    %c0_i32_1 = arith.constant 0 : i32
    return %c0_i32, %c0_i32_0 : i32, i32
  }
  func.func @transform_5(%arg0: i32) -> (i32, i32) {
    %c0_i32 = arith.constant 0 : i32
    %c0_i32_0 = arith.constant 0 : i32
    %c0_i32_1 = arith.constant 0 : i32
    return %c0_i32, %c0_i32_0 : i32, i32
  }
  func.func @transform_6(%arg0: i32) -> (i32, i32) {
    %c0_i32 = arith.constant 0 : i32
    %c0_i32_0 = arith.constant 0 : i32
    %c0_i32_1 = arith.constant 0 : i32
    return %c0_i32, %c0_i32_0 : i32, i32
  }
  func.func @transform_7(%arg0: i32) -> (i32, i32) {
    %c0_i32 = arith.constant 0 : i32
    %c0_i32_0 = arith.constant 0 : i32
    %c0_i32_1 = arith.constant 0 : i32
    return %c0_i32, %c0_i32_0 : i32, i32
  }
  func.func @transform_8(%arg0: i32) -> (i32, i32) {
    %c0_i32 = arith.constant 0 : i32
    %c0_i32_0 = arith.constant 0 : i32
    %c0_i32_1 = arith.constant 0 : i32
    return %c0_i32, %c0_i32_0 : i32, i32
  }
  func.func @transform_9(%arg0: i32) -> (i32, i32) {
    %c0_i32 = arith.constant 0 : i32
    %c0_i32_0 = arith.constant 0 : i32
    %c0_i32_1 = arith.constant 0 : i32
    return %c0_i32, %c0_i32_0 : i32, i32
  }
  func.func @transform_10(%arg0: i32) -> (i32, i32) {
    %c0_i32 = arith.constant 0 : i32
    %c0_i32_0 = arith.constant 0 : i32
    %c0_i32_1 = arith.constant 0 : i32
    return %c0_i32, %c0_i32_0 : i32, i32
  }
  func.func @transform_11(%arg0: i32) -> (i32, i32) {
    %c0_i32 = arith.constant 0 : i32
    %c0_i32_0 = arith.constant 0 : i32
    %c0_i32_1 = arith.constant 0 : i32
    return %c0_i32, %c0_i32_0 : i32, i32
  }
  func.func @transform_12(%arg0: i32) -> (i32, i32) {
    %c0_i32 = arith.constant 0 : i32
    %c0_i32_0 = arith.constant 0 : i32
    %c0_i32_1 = arith.constant 0 : i32
    return %c0_i32, %c0_i32_0 : i32, i32
  }
}

</mosaic_0001>

<bundles_post_ra>
// kernel: tpu_custom_call.1
= control target key start
LH: loop header
LB: loop body
LE: loop exit
PB: predicated region body
PF: predicated region fallthrough
CT: control target
= control target key end

     0   :  { %17 = vsyncpa [#allocation3], 0  ;;  %s3137_s0 = inlined_call_operand.hbm [shape: s8[128,128], index: 0, kind: input, shape index: {}]   ;;  %s3138_s1 = inlined_call_operand.vmem [shape: f32[128,1], index: 1, kind: input, shape index: {}]   ;;  %s3139_s2 = inlined_call_operand.vmem [shape: bf16[128,128], index: 2, kind: input, shape index: {}]   ;;  %s3140_s3 = inlined_call_operand.vmem [shape: bf16[128,128], index: 3, kind: input, shape index: {}]   ;;  %s3141_s4 = inlined_call_operand.hbm [shape: bf16[128,128], index: 4, kind: input, shape index: {}]   ;;  %s3142_s5 = inlined_call_operand.vmem [shape: f32[1,128], index: 5, kind: input, shape index: {}]   ;;  %s3143_s6 = inlined_call_operand.hbm [shape: bf16[128,128], index: 6, kind: input, shape index: {}]   ;;  %s3144_s7 = inlined_call_operand.hbm [shape: bf16[128,128], index: 7, kind: input, shape index: {}]   ;;  %s3145_s8 = inlined_call_operand.vmem [shape: f32[1,128], index: 8, kind: input, shape index: {}]   ;;  %s3146_s9 = inlined_call_operand.hbm [shape: bf16[128,128], index: 9, kind: input, shape index: {}]   ;;  %s3147_s10 = inlined_call_operand.hbm [shape: bf16[128,128], index: 10, kind: input, shape index: {}]   ;;  %s3148_s11 = inlined_call_operand.vmem [shape: f32[1,128], index: 11, kind: input, shape index: {}]   ;;  %s3149_s12 = inlined_call_operand.hbm [shape: f32[128,128], index: 12, kind: output, shape index: {}]  }
   0x1   :  { %18 = vsyncpa [#allocation6], 0 }
   0x2   :  { %19 = vsyncpa [#allocation9], 0 }
   0x3   :  { %20 = vsyncpa [#allocation12], 0 }
   0x4   :  { %21 = vsyncpa [#allocation4], 0  ;;  %s2520_s21 = smov [#allocation5]   ;;  %s2356_s25 = scalar_lea.hbm %s3141_s4, 1024 }
   0x5   :  { %s45_s22 = sshll.u32 %s2520_s21, 4  ;;  %p2357_p0 = scmp.ne.s32.totalorder %s3141_s4, %s2356_s25  ;;  %s46_s22 = int_to_ptr.vmem [resolvable:$true] %s45_s22 }
   0x6   :  { %p2360_p1 = scmp.lt.u32.totalorder %s2356_s25, %s3141_s4 }
   0x8   :  { %p2362_p2 = pnand %p2360_p1, %p2357_p0 }
   0xa   :  { %2365 = shalt.err (!%p2362_p2)
}
   0xb   :  { %s2366_s30 = scalar_lea.vmem %s46_s22, 1024  ;;  %p2371_p4 = scmp.lt.s32.totalorder %s46_s22, %s46_s22 }
   0xc   :  { %p2367_p3 = scmp.ne.s32.totalorder %s46_s22, %s2366_s30  ;;  %p2372_p5 = scmp.lt.s32.totalorder %s2366_s30, %s2366_s30 }
   0xe   :  { %p2373_p6 = por %p2372_p5, %p2371_p4 }
  0x10   :  { %p2374_p7 = pnand %p2373_p6, %p2367_p3 }
  0x12   :  { %2377 = shalt.err (!%p2374_p7)
}
  0x13   :  { %s2521_s13 = smov 64   ;;  %s2522_s14 = smov 4  }
  0x14   :  { %51 = dma.hbm_to_vmem [thread:$0]  %s3141_s4, 1024, %s46_s22, [#allocation6], %s2521_s13, %s2521_s13, %s2522_s14  }
  0x15   :  { %s2523_s17 = smov [#allocation8]   ;;  %s2524_s19 = smov [#allocation2]  }
  0x16   :  { %s71_s18 = sshll.u32 %s2523_s17, 4  ;;  %s27_s20 = sshll.u32 %s2524_s19, 4  ;;  %s72_s18 = int_to_ptr.vmem [resolvable:$true] %s71_s18  ;;  %s28_s20 = int_to_ptr.vmem [resolvable:$true] %s27_s20 }
  0x17   :  { %s2378_s24 = scalar_lea.hbm %s3144_s7, 1024 }
  0x18   :  { %p2379_p8 = scmp.ne.s32.totalorder %s3144_s7, %s2378_s24  ;;  %p2382_p9 = scmp.lt.u32.totalorder %s2378_s24, %s3144_s7 }
  0x1a   :  { %p2384_p10 = pnand %p2382_p9, %p2379_p8 }
  0x1c   :  { %2387 = shalt.err (!%p2384_p10)
}
  0x1d   :  { %s2388_s4 = scalar_lea.vmem %s72_s18, 1024  ;;  %p2393_p12 = scmp.lt.s32.totalorder %s72_s18, %s72_s18 }
  0x1e   :  { %p2389_p11 = scmp.ne.s32.totalorder %s72_s18, %s2388_s4  ;;  %p2394_p13 = scmp.lt.s32.totalorder %s2388_s4, %s2388_s4 }
  0x20   :  { %p2395_p0 = por %p2394_p13, %p2393_p12 }
  0x22   :  { %p2396_p1 = pnand %p2395_p0, %p2389_p11 }
  0x24   :  { %2399 = shalt.err (!%p2396_p1)
}
  0x25   :  { %77 = dma.hbm_to_vmem [thread:$0]  %s3144_s7, 1024, %s72_s18, [#allocation9], %s2521_s13, %s2521_s13, %s2522_s14  }
  0x26   :  { %s2400_s16 = scalar_lea.hbm %s3137_s0, 512 }
  0x27   :  { %p2401_p2 = scmp.ne.s32.totalorder %s3137_s0, %s2400_s16  ;;  %p2404_p3 = scmp.lt.u32.totalorder %s2400_s16, %s3137_s0 }
  0x29   :  { %p2406_p4 = pnand %p2404_p3, %p2401_p2 }
  0x2b   :  { %2409 = shalt.err (!%p2406_p4)
}
  0x2c   :  { %s2410_s24 = scalar_lea.vmem %s28_s20, 512  ;;  %p2415_p6 = scmp.lt.s32.totalorder %s28_s20, %s28_s20 }
  0x2d   :  { %p2411_p5 = scmp.ne.s32.totalorder %s28_s20, %s2410_s24  ;;  %p2416_p7 = scmp.lt.s32.totalorder %s2410_s24, %s2410_s24 }
  0x2f   :  { %p2417_p8 = por %p2416_p7, %p2415_p6 }
  0x31   :  { %p2418_p9 = pnand %p2417_p8, %p2411_p5 }
  0x33   :  { %2421 = shalt.err (!%p2418_p9)
}
  0x34   :  { %s2525_s7 = smov 128   ;;  %s2526_s18 = smov 8  }
  0x35   :  { %33 = dma.hbm_to_vmem [thread:$0]  %s3137_s0, 512, %s28_s20, [#allocation3], %s2525_s7, %s2525_s7, %s2526_s18  }
  0x36   :  { %s2527_s27 = smov [#allocation7]   ;;  %s2528_s4 = smov [#allocation10]  }
  0x37   :  { %s59_s28 = sshll.u32 %s2527_s27, 4  ;;  %s85_s22 = sshll.u32 %s2528_s4, 4  ;;  %s60_s28 = int_to_ptr.vmem [resolvable:$true] %s59_s28  ;;  %s86_s22 = int_to_ptr.vmem [resolvable:$true] %s85_s22 }
  0x38   :  { %s2422_s15 = scalar_lea.hbm %s3143_s6, 1024 }
  0x39   :  { %p2423_p10 = scmp.ne.s32.totalorder %s3143_s6, %s2422_s15  ;;  %p2426_p11 = scmp.lt.u32.totalorder %s2422_s15, %s3143_s6 }
  0x3b   :  { %p2428_p12 = pnand %p2426_p11, %p2423_p10 }
  0x3d   :  { %2431 = shalt.err (!%p2428_p12)
}
  0x3e   :  { %s2432_s0 = scalar_lea.vmem %s60_s28, 1024  ;;  %p2437_p0 = scmp.lt.s32.totalorder %s60_s28, %s60_s28 }
  0x3f   :  { %p2433_p13 = scmp.ne.s32.totalorder %s60_s28, %s2432_s0  ;;  %p2438_p1 = scmp.lt.s32.totalorder %s2432_s0, %s2432_s0 }
  0x41   :  { %p2439_p2 = por %p2438_p1, %p2437_p0 }
  0x43   :  { %p2440_p3 = pnand %p2439_p2, %p2433_p13 }
  0x45   :  { %2443 = shalt.err (!%p2440_p3)
}
  0x46   :  { %65 = dma.hbm_to_vmem [thread:$0]  %s3143_s6, 1024, %s60_s28, [#allocation6], %s2521_s13, %s2521_s13, %s2522_s14  }
  0x47   :  { %s2444_s26 = scalar_lea.hbm %s3146_s9, 1024 }
  0x48   :  { %p2445_p4 = scmp.ne.s32.totalorder %s3146_s9, %s2444_s26  ;;  %p2448_p5 = scmp.lt.u32.totalorder %s2444_s26, %s3146_s9 }
  0x4a   :  { %p2450_p6 = pnand %p2448_p5, %p2445_p4 }
  0x4c   :  { %2453 = shalt.err (!%p2450_p6)
}
  0x4d   :  { %s2454_s15 = scalar_lea.vmem %s86_s22, 1024  ;;  %p2459_p8 = scmp.lt.s32.totalorder %s86_s22, %s86_s22 }
  0x4e   :  { %p2455_p7 = scmp.ne.s32.totalorder %s86_s22, %s2454_s15  ;;  %p2460_p9 = scmp.lt.s32.totalorder %s2454_s15, %s2454_s15 }
  0x50   :  { %p2461_p10 = por %p2460_p9, %p2459_p8 }
  0x52   :  { %p2462_p11 = pnand %p2461_p10, %p2455_p7 }
  0x54   :  { %2465 = shalt.err (!%p2462_p11)
}
  0x55   :  { %91 = dma.hbm_to_vmem [thread:$0]  %s3146_s9, 1024, %s86_s22, [#allocation9], %s2521_s13, %s2521_s13, %s2522_s14  }
  0x56   :  { %s2529_s16 = smov [#allocation11]   ;;  %s2466_s0 = scalar_lea.hbm %s3147_s10, 1024 }
  0x57   :  { %s97_s17 = sshll.u32 %s2529_s16, 4  ;;  %p2467_p12 = scmp.ne.s32.totalorder %s3147_s10, %s2466_s0  ;;  %s98_s17 = int_to_ptr.vmem [resolvable:$true] %s97_s17 }
  0x58   :  { %p2470_p13 = scmp.lt.u32.totalorder %s2466_s0, %s3147_s10 }
  0x5a   :  { %p2472_p0 = pnand %p2470_p13, %p2467_p12 }
  0x5c   :  { %2475 = shalt.err (!%p2472_p0)
}
  0x5d   :  { %s2476_s26 = scalar_lea.vmem %s98_s17, 1024  ;;  %p2481_p2 = scmp.lt.s32.totalorder %s98_s17, %s98_s17 }
  0x5e   :  { %p2477_p1 = scmp.ne.s32.totalorder %s98_s17, %s2476_s26  ;;  %p2482_p3 = scmp.lt.s32.totalorder %s2476_s26, %s2476_s26 }
  0x60   :  { %p2483_p4 = por %p2482_p3, %p2481_p2 }
  0x62   :  { %p2484_p5 = pnand %p2483_p4, %p2477_p1 }
  0x64   :  { %2487 = shalt.err (!%p2484_p5)
}
  0x65   :  { %103 = dma.hbm_to_vmem [thread:$0]  %s3147_s10, 1024, %s98_s17, [#allocation12], %s2521_s13, %s2521_s13, %s2522_s14  }
  0x66   :  { %2510 = dma.done.wait [#allocation3], 512  }
  0x67   :  { %2511 = vsyncadd [#allocation3], 4294966784 }
  0x68   :  { %2512 = dma.done.wait [#allocation6], 2048  }
  0x69   :  { %2513 = vsyncadd [#allocation6], 4294965248 }
  0x6a   :  { %2514 = dma.done.wait [#allocation9], 2048  }
  0x6b   :  { %2515 = vsyncadd [#allocation9], 4294965248 }
  0x6c   :  { %2516 = dma.done.wait [#allocation12], 1024  }
  0x6d   :  { %2517 = vsyncadd [#allocation12], 4294966272  ;;  %v2300_v0 = vld [vmem:[#allocation5] sm:$0xff]   ;;  %v2301_v1 = vld [vmem:[#allocation5 + $0x8] sm:$0xff]   ;;  %v2530_v28 = vmov 0  }
  0x6e   :  { %1982 = vmatprep.subr.bf16.mxu0 %v2300_v0  ;;  %v2302_v2 = vld [vmem:[#allocation5 + $0x10] sm:$0xff]   ;;  %v2303_v3 = vld [vmem:[#allocation5 + $0x18] sm:$0xff]   ;;  %v2308_v4 = vld [vmem:[%s3139_s2] sm:$0xff]   ;;  %2298 = vset.pattern.permute.xlu0 %v2530_v28 }
  0x6f   :  { %1983 = vmatpush3.bf16.msra.mxu0 %v2300_v0  ;;  %1998 = vmatprep.mubr.bf16.mxu0 %v2308_v4  ;;  %v2304_v5 = vld [vmem:[#allocation5 + $0x20] sm:$0xff]   ;;  %v2305_v6 = vld [vmem:[#allocation5 + $0x28] sm:$0xff]   ;;  %v2306_v7 = vld [vmem:[#allocation5 + $0x30] sm:$0xff]  }
  0x70   :  { %1984 = vmatprep.subr.bf16.mxu0 %v2301_v1  ;;  %v2307_v8 = vld [vmem:[#allocation5 + $0x38] sm:$0xff]   ;;  %v2309_v9 = vld [vmem:[%s3139_s2 + $0x8] sm:$0xff]   ;;  %v2310_v10 = vld [vmem:[%s3139_s2 + $0x10] sm:$0xff]   ;;  %2299 = vset.pattern.permute.xlu1 %v2530_v28 }
  0x71   :  { %v2311_v11 = vld [vmem:[%s3139_s2 + $0x18] sm:$0xff]   ;;  %v2312_v12 = vld [vmem:[%s3139_s2 + $0x20] sm:$0xff]   ;;  %v2313_v13 = vld [vmem:[%s3139_s2 + $0x28] sm:$0xff]  }
  0x72   :  { %v2314_v14 = vld [vmem:[%s3139_s2 + $0x30] sm:$0xff]   ;;  %v2315_v15 = vld [vmem:[%s3139_s2 + $0x38] sm:$0xff]   ;;  %v2316_v16 = vld [vmem:[%s3140_s3] sm:$0xff]  }
  0x73   :  { %1985 = vmatpush3.bf16.msra.mxu0 %v2301_v1  ;;  %v2317_v17 = vld [vmem:[%s3140_s3 + $0x8] sm:$0xff]   ;;  %v2318_v18 = vld [vmem:[%s3140_s3 + $0x10] sm:$0xff]   ;;  %v2319_v19 = vld [vmem:[%s3140_s3 + $0x18] sm:$0xff]  }
  0x74   :  { %1986 = vmatprep.subr.bf16.mxu0 %v2302_v2  ;;  %v2320_v20 = vld [vmem:[%s3140_s3 + $0x20] sm:$0xff]   ;;  %v2321_v21 = vld [vmem:[%s3140_s3 + $0x28] sm:$0xff]   ;;  %v2322_v22 = vld [vmem:[%s3140_s3 + $0x30] sm:$0xff]  }
  0x75   :  { %v2323_v23 = vld [vmem:[%s3140_s3 + $0x38] sm:$0xff]   ;;  %v2735_v24 = vld [vmem:[#allocation2] sm:$0xff]  ;;  %v139_v27 = vld [vmem:[%s3138_s1 + $0x10] sm:$0xff] }
  0x76   :  { %v2738_v25 = vunpack.c.l.s8.bf16 %v2735_v24  ;;  %v137_v26 = vld [vmem:[%s3138_s1] sm:$0xff]  ;;  %512 = vperm.xlu1 %2299, %v139_v27   ;;  %v138_v29 = vld [vmem:[%s3138_s1 + $0x8] sm:$0xff]  ;;  %v140_v30 = vld [vmem:[%s3138_s1 + $0x18] sm:$0xff] }
  0x77   :  { %1987 = vmatpush3.bf16.msra.mxu0 %v2302_v2  ;;  %502 = vperm.xlu0 %2298, %v137_v26   ;;  %v141_v31 = vld [vmem:[%s3138_s1 + $0x20] sm:$0xff]  ;;  %v142_v32 = vld [vmem:[%s3138_s1 + $0x28] sm:$0xff]  ;;  %v143_v33 = vld [vmem:[%s3138_s1 + $0x30] sm:$0xff] }
  0x78   :  { %1988 = vmatprep.subr.bf16.mxu0 %v2303_v3  ;;  %2030 = vmatprep.mubr.bf16.mxu1 %v2738_v25  ;;  %v144_v34 = vld [vmem:[%s3138_s1 + $0x38] sm:$0xff]  ;;  %v145_v35 = vld [vmem:[%s3138_s1 + $0x40] sm:$0xff]  ;;  %v146_v36 = vld [vmem:[%s3138_s1 + $0x48] sm:$0xff] }
  0x79   :  { %v147_v37 = vld [vmem:[%s3138_s1 + $0x50] sm:$0xff]  ;;  %v148_v38 = vld [vmem:[%s3138_s1 + $0x58] sm:$0xff]  ;;  %v149_v39 = vld [vmem:[%s3138_s1 + $0x60] sm:$0xff] }
  0x7a   :  { %517 = vperm.xlu1 %2299, %v140_v30   ;;  %v150_v40 = vld [vmem:[%s3138_s1 + $0x68] sm:$0xff]  ;;  %v151_v41 = vld [vmem:[%s3138_s1 + $0x70] sm:$0xff]  ;;  %v152_v42 = vld [vmem:[%s3138_s1 + $0x78] sm:$0xff] }
  0x7b   :  { %1989 = vmatpush3.bf16.msra.mxu0 %v2303_v3  ;;  %507 = vperm.xlu0 %2298, %v138_v29   ;;  %v126_v3 = vld [vmem:[#allocation2 + $0x8] sm:$0xff]  ;;  %v2331_v28 = vld [vmem:[#allocation8 + $0x38] sm:$0xff]   ;;  %v2812_v30 = vld [vmem:[#allocation7] sm:$0xff]  }
  0x7c   :  { %1990 = vmatprep.subr.bf16.mxu0 %v2304_v5 }
  0x7e   :  { %527 = vperm.xlu1 %2299, %v142_v32  }
  0x7f   :  { %1991 = vmatpush3.bf16.msra.mxu0 %v2304_v5  ;;  %522 = vperm.xlu0 %2298, %v141_v31   ;;  %v2791_v5 = vunpack.c.h.s8.bf16 %v2735_v24 }
  0x80   :  { %1992 = vmatprep.subr.bf16.mxu0 %v2305_v6 }
  0x82   :  { %537 = vperm.xlu1 %2299, %v144_v34  }
  0x83   :  { %1993 = vmatpush3.bf16.msra.mxu0 %v2305_v6  ;;  %532 = vperm.xlu0 %2298, %v143_v33   ;;  %v2793_v6 = vunpack.c.l.s8.bf16 %v126_v3 }
  0x84   :  { %1994 = vmatprep.subr.bf16.mxu0 %v2306_v7 }
  0x86   :  { %547 = vperm.xlu1 %2299, %v146_v36  }
  0x87   :  { %1995 = vmatpush3.bf16.msra.mxu0 %v2306_v7  ;;  %542 = vperm.xlu0 %2298, %v145_v35   ;;  %v2325_v7 = vld [vmem:[#allocation8 + $0x8] sm:$0xff]  }
  0x88   :  { %1996 = vmatprep.subr.bf16.mxu0 %v2307_v8 }
  0x8a   :  { %557 = vperm.xlu1 %2299, %v148_v38  }
  0x8b   :  { %1997 = vmatpush3.bf16.msra.mxu0 %v2307_v8  ;;  %552 = vperm.xlu0 %2298, %v147_v37   ;;  %v127_v8 = vld [vmem:[#allocation2 + $0x10] sm:$0xff] }
  0x8c   :  { %2046 = vmatprep.subr.bf16.mxu0 %v2316_v16 }
  0x8e   :  { %1999 = vmatmul.mubr.bf16.vlgmr.msra.gmra.mrb[0].mxu0 %v2309_v9  ;;  %567 = vperm.xlu1 %2299, %v150_v40  }
  0x8f   :  { %2002 = vmatprep.mubr.bf16.mxu0 %v2310_v10  ;;  %2047 = vmatpush3.bf16.msra.mxu0 %v2316_v16 }
  0x90   :  { %2048 = vmatprep.subr.bf16.mxu0 %v2317_v17  ;;  %562 = vperm.xlu0 %2298, %v149_v39  }
  0x92   :  { %577 = vperm.xlu1 %2299, %v152_v42  }
  0x93   :  { %2049 = vmatpush3.bf16.msra.mxu0 %v2317_v17 }
  0x94   :  { %2050 = vmatprep.subr.bf16.mxu0 %v2318_v18  ;;  %572 = vperm.xlu0 %2298, %v151_v41  }
  0x96   :  { %2003 = vmatmul.mubr.bf16.gmra.mrb[4].mxu0 %v2311_v11 }
  0x97   :  { %2006 = vmatprep.mubr.bf16.mxu0 %v2312_v12  ;;  %2051 = vmatpush3.bf16.msra.mxu0 %v2318_v18 }
  0x98   :  { %2052 = vmatprep.subr.bf16.mxu0 %v2319_v19 }
  0x9b   :  { %2053 = vmatpush3.bf16.msra.mxu0 %v2319_v19 }
  0x9c   :  { %2054 = vmatprep.subr.bf16.mxu0 %v2320_v20 }
  0x9e   :  { %2007 = vmatmul.mubr.bf16.gmra.mrb[8].mxu0 %v2313_v13 }
  0x9f   :  { %2010 = vmatprep.mubr.bf16.mxu0 %v2314_v14  ;;  %2055 = vmatpush3.bf16.msra.mxu0 %v2320_v20 }
  0xa0   :  { %2056 = vmatprep.subr.bf16.mxu0 %v2321_v21 }
  0xa3   :  { %2057 = vmatpush3.bf16.msra.mxu0 %v2321_v21  ;;  %v2329_v21 = vld [vmem:[#allocation8 + $0x28] sm:$0xff]  }
  0xa4   :  { %2058 = vmatprep.subr.bf16.mxu0 %v2322_v22 }
  0xa6   :  { %2011 = vmatmul.mubr.bf16.gmra.mrb[12].mxu0 %v2315_v15 }
  0xa7   :  { %2062 = vmatprep.mubr.bf16.mxu0 %v2308_v4  ;;  %2059 = vmatpush3.bf16.msra.mxu0 %v2322_v22  ;;  %v2324_v4 = vld [vmem:[#allocation8] sm:$0xff]  }
  0xa8   :  { %2060 = vmatprep.subr.bf16.mxu0 %v2323_v23 }
  0xab   :  { %2061 = vmatpush3.bf16.msra.mxu0 %v2323_v23  ;;  %v2330_v23 = vld [vmem:[#allocation8 + $0x30] sm:$0xff]  }
  0xae   :  { %2063 = vmatmul.mubr.bf16.vlgmr.msra.gmra.mrb[16].mxu0 %v2309_v9  ;;  %v2326_v9 = vld [vmem:[#allocation8 + $0x10] sm:$0xff]  }
  0xaf   :  { %2066 = vmatprep.mubr.bf16.mxu0 %v2310_v10  ;;  %v2797_v10 = vunpack.c.h.s8.bf16 %v126_v3 }
  0xb6   :  { %2067 = vmatmul.mubr.bf16.gmra.mrb[20].mxu0 %v2311_v11  ;;  %v2799_v11 = vunpack.c.l.s8.bf16 %v127_v8 }
  0xb7   :  { %2070 = vmatprep.mubr.bf16.mxu0 %v2312_v12  ;;  %v2327_v12 = vld [vmem:[#allocation8 + $0x18] sm:$0xff]  }
  0xbe   :  { %2071 = vmatmul.mubr.bf16.gmra.mrb[24].mxu0 %v2313_v13  ;;  %v128_v13 = vld [vmem:[#allocation2 + $0x18] sm:$0xff] }
  0xbf   :  { %2074 = vmatprep.mubr.bf16.mxu0 %v2314_v14  ;;  %v2328_v14 = vld [vmem:[#allocation8 + $0x20] sm:$0xff]   ;;  %v2805_v16 = vunpack.c.l.s8.bf16 %v128_v13  ;;  %v2809_v17 = vunpack.c.h.s8.bf16 %v128_v13 }
  0xc6   :  { %2075 = vmatmul.mubr.bf16.gmra.mrb[28].mxu0 %v2315_v15  ;;  %v2803_v15 = vunpack.c.h.s8.bf16 %v127_v8 }
  0xc7   :  { %2126 = vmatprep.mubr.bf16.mxu0 %v2738_v25 }
  0xf5   :  { %v2833_v40 = vpop.permute.xlu1 %512 }
  0xf6   :  { %v2831_v39 = vpop.permute.xlu0 %502 }
  0xf9   :  { %v2837_v42 = vpop.permute.xlu1 %517 }
  0xfa   :  { %v2835_v41 = vpop.permute.xlu0 %507 }
 0x161   :  { %v2000_v43 = vpop.f32.mrb[0].mxu0 }
 0x162   :  { %v332_v44 = vpop.f32.mrb[1].mxu0 }
 0x163   :  { %v2001_v45 = vpop.f32.mrb[2].mxu0 }
 0x164   :  { %v396_v46 = vpack.c.bf16 %v2001_v45, %v2000_v43  ;;  %v335_v47 = vpop.f32.mrb[3].mxu0  ;;  %v2839_v43 = vpop.permute.xlu0 %522 }
 0x165   :  { %v395_v48 = vpack.c.bf16 %v335_v47, %v332_v44  ;;  %v2841_v44 = vpop.permute.xlu1 %527 }
 0x167   :  { %2014 = vmatprep.subr.bf16.mxu1 %v395_v48 }
 0x168   :  { %2015 = vmatpush3.bf16.msra.mxu1 %v395_v48  ;;  %v2843_v45 = vpop.permute.xlu0 %532 }
 0x169   :  { %v2004_v49 = vpop.f32.mrb[4].mxu0  ;;  %2016 = vmatprep.subr.bf16.mxu1 %v396_v46 }
 0x16a   :  { %v348_v50 = vpop.f32.mrb[5].mxu0 }
 0x16b   :  { %v2005_v51 = vpop.f32.mrb[6].mxu0 }
 0x16c   :  { %v398_v52 = vpack.c.bf16 %v2005_v51, %v2004_v49  ;;  %v351_v53 = vpop.f32.mrb[7].mxu0  ;;  %2017 = vmatpush3.bf16.msra.mxu1 %v396_v46  ;;  %v2846_v49 = vpop.permute.xlu1 %537 }
 0x16d   :  { %v397_v54 = vpack.c.bf16 %v351_v53, %v348_v50  ;;  %v2851_v50 = vld [vmem:[%s3142_s5] ss:$0 sm:$0xff] }
 0x16f   :  { %2018 = vmatprep.subr.bf16.mxu1 %v397_v54 }
 0x170   :  { %2019 = vmatpush3.bf16.msra.mxu1 %v397_v54 }
 0x171   :  { %v2008_v55 = vpop.f32.mrb[8].mxu0  ;;  %2020 = vmatprep.subr.bf16.mxu1 %v398_v52 }
 0x172   :  { %v364_v56 = vpop.f32.mrb[9].mxu0 }
 0x173   :  { %v2009_v57 = vpop.f32.mrb[10].mxu0 }
 0x174   :  { %v400_v58 = vpack.c.bf16 %v2009_v57, %v2008_v55  ;;  %v367_v59 = vpop.f32.mrb[11].mxu0  ;;  %2021 = vmatpush3.bf16.msra.mxu1 %v398_v52 }
 0x175   :  { %v399_v60 = vpack.c.bf16 %v367_v59, %v364_v56 }
 0x177   :  { %2022 = vmatprep.subr.bf16.mxu1 %v399_v60 }
 0x178   :  { %2023 = vmatpush3.bf16.msra.mxu1 %v399_v60  ;;  %v2857_v60 = vpop.permute.xlu0 %542 }
 0x179   :  { %v2012_v61 = vpop.f32.mrb[12].mxu0  ;;  %2024 = vmatprep.subr.bf16.mxu1 %v400_v58 }
 0x17a   :  { %v380_v62 = vpop.f32.mrb[13].mxu0 }
 0x17b   :  { %v2013_v63 = vpop.f32.mrb[14].mxu0 }
 0x17c   :  { %v402_v0 = vpack.c.bf16 %v2013_v63, %v2012_v61  ;;  %v383_v1 = vpop.f32.mrb[15].mxu0  ;;  %2025 = vmatpush3.bf16.msra.mxu1 %v400_v58 }
 0x17d   :  { %v401_v2 = vpack.c.bf16 %v383_v1, %v380_v62 }
 0x17f   :  { %2026 = vmatprep.subr.bf16.mxu1 %v401_v2 }
 0x180   :  { %2027 = vmatpush3.bf16.msra.mxu1 %v401_v2 }
 0x181   :  { %2028 = vmatprep.subr.bf16.mxu1 %v402_v0  ;;  %v2064_v18 = vpop.f32.mrb[16].mxu0 }
 0x182   :  { %v678_v19 = vpop.f32.mrb[17].mxu0 }
 0x183   :  { %v2065_v20 = vpop.f32.mrb[18].mxu0 }
 0x184   :  { %2029 = vmatpush3.bf16.msra.mxu1 %v402_v0  ;;  %v681_v22 = vpop.f32.mrb[19].mxu0  ;;  %v2861_v0 = vpop.permute.xlu1 %547 }
 0x185   :  { %2078 = vmatprep.subr.bf16.mxu1 %v2324_v4 }
 0x187   :  { %2031 = vmatmul.mubr.bf16.vlgmr.msra.gmra.mrb[0].mxu1 %v2791_v5 }
 0x188   :  { %2034 = vmatprep.mubr.bf16.mxu1 %v2793_v6  ;;  %2079 = vmatpush3.bf16.msra.mxu1 %v2324_v4 }
 0x189   :  { %2080 = vmatprep.subr.bf16.mxu1 %v2325_v7  ;;  %v2068_v24 = vpop.f32.mrb[20].mxu0 }
 0x18a   :  { %v694_v26 = vpop.f32.mrb[21].mxu0 }
 0x18b   :  { %v2069_v27 = vpop.f32.mrb[22].mxu0 }
 0x18c   :  { %2081 = vmatpush3.bf16.msra.mxu1 %v2325_v7  ;;  %v697_v29 = vpop.f32.mrb[23].mxu0 }
 0x18d   :  { %2082 = vmatprep.subr.bf16.mxu1 %v2326_v9 }
 0x18f   :  { %2035 = vmatmul.mubr.bf16.gmra.mrb[4].mxu1 %v2797_v10 }
 0x190   :  { %2038 = vmatprep.mubr.bf16.mxu1 %v2799_v11  ;;  %2083 = vmatpush3.bf16.msra.mxu1 %v2326_v9 }
 0x191   :  { %2084 = vmatprep.subr.bf16.mxu1 %v2327_v12  ;;  %v2814_v31 = vpop.f32.mrb[24].mxu0 }
 0x192   :  { %v2817_v32 = vpop.f32.mrb[25].mxu0 }
 0x193   :  { %v2819_v33 = vpop.f32.mrb[26].mxu0 }
 0x194   :  { %2085 = vmatpush3.bf16.msra.mxu1 %v2327_v12  ;;  %v2821_v34 = vpop.f32.mrb[27].mxu0 }
 0x195   :  { %2086 = vmatprep.subr.bf16.mxu1 %v2328_v14 }
 0x197   :  { %2039 = vmatmul.mubr.bf16.gmra.mrb[8].mxu1 %v2803_v15 }
 0x198   :  { %2042 = vmatprep.mubr.bf16.mxu1 %v2805_v16  ;;  %2087 = vmatpush3.bf16.msra.mxu1 %v2328_v14 }
 0x199   :  { %2088 = vmatprep.subr.bf16.mxu1 %v2329_v21  ;;  %v2823_v35 = vpop.f32.mrb[28].mxu0 }
 0x19a   :  { %v2825_v36 = vpop.f32.mrb[29].mxu0 }
 0x19b   :  { %v2827_v37 = vpop.f32.mrb[30].mxu0 }
 0x19c   :  { %2089 = vmatpush3.bf16.msra.mxu1 %v2329_v21  ;;  %v2829_v38 = vpop.f32.mrb[31].mxu0 }
 0x19d   :  { %2090 = vmatprep.subr.bf16.mxu1 %v2330_v23 }
 0x19f   :  { %2043 = vmatmul.mubr.bf16.gmra.mrb[12].mxu1 %v2809_v17 }
 0x1a0   :  { %2091 = vmatpush3.bf16.msra.mxu1 %v2330_v23 }
 0x1a1   :  { %2092 = vmatprep.subr.bf16.mxu1 %v2331_v28 }
 0x1a4   :  { %2093 = vmatpush3.bf16.msra.mxu1 %v2331_v28 }
 0x1a5   :  { %2142 = vmatprep.subr.bf16.mxu1 %v2812_v30 }
 0x25a   :  { %v2032_v46 = vpop.f32.mrb[0].mxu1 }
 0x25b   :  { %v582_v47 = vmul.f32 %v2032_v46, %v2833_v40  ;;  %v437_v48 = vpop.f32.mrb[1].mxu1 }
 0x25c   :  { %v580_v51 = vmul.f32 %v2831_v39, %v437_v48  ;;  %v2033_v52 = vpop.f32.mrb[2].mxu1 }
 0x25d   :  { %v687_v53 = vadd.f32 %v2064_v18, %v582_v47  ;;  %v583_v54 = vmul.f32 %v2033_v52, %v2837_v42  ;;  %v440_v55 = vpop.f32.mrb[3].mxu1  ;;  %v2875_v52 = vpop.permute.xlu1 %557 }
 0x25e   :  { %v679_v56 = vadd.f32 %v678_v19, %v580_v51  ;;  %v581_v57 = vmul.f32 %v2835_v41, %v440_v55  ;;  %v2333_v51 = vld [vmem:[#allocation7 + $0x8] sm:$0xff]  }
 0x25f   :  { %v749_v58 = vadd.f32 %v2851_v50, %v687_v53  ;;  %v690_v59 = vadd.f32 %v2065_v20, %v583_v54 }
 0x260   :  { %v747_v61 = vadd.f32 %v2851_v50, %v679_v56  ;;  %v682_v62 = vadd.f32 %v681_v22, %v581_v57  ;;  %v2869_v22 = vpop.permute.xlu0 %552 }
 0x261   :  { %v750_v63 = vadd.f32 %v2851_v50, %v690_v59  ;;  %v765_v3 = vmax.f32 %v749_v58, 0.0  ;;  %v2334_v59 = vld [vmem:[#allocation7 + $0x10] sm:$0xff]  }
 0x262   :  { %v748_v1 = vadd.f32 %v2851_v50, %v682_v62  ;;  %v2036_v2 = vpop.f32.mrb[4].mxu1  ;;  %v763_v9 = vmax.f32 %v747_v61, 0.0 }
 0x263   :  { %v766_v4 = vmax.f32 %v750_v63, 0.0  ;;  %v586_v7 = vmul.f32 %v2036_v2, %v2843_v45  ;;  %v453_v8 = vpop.f32.mrb[5].mxu1 }
 0x264   :  { %v764_v12 = vmax.f32 %v748_v1, 0.0  ;;  %v584_v13 = vmul.f32 %v2839_v43, %v453_v8  ;;  %v2037_v14 = vpop.f32.mrb[6].mxu1  ;;  %v2884_v61 = vpop.permute.xlu0 %562 }
 0x265   :  { %v2866_v18 = vpack.c.bf16 %v766_v4, %v765_v3  ;;  %v703_v19 = vadd.f32 %v2068_v24, %v586_v7  ;;  %v587_v20 = vmul.f32 %v2037_v14, %v2846_v49  ;;  %v456_v21 = vpop.f32.mrb[7].mxu1  ;;  %v2891_v7 = vpop.permute.xlu1 %567 }
 0x266   :  { %v695_v23 = vadd.f32 %v694_v26, %v584_v13  ;;  %v585_v28 = vmul.f32 %v2841_v44, %v456_v21  ;;  %v2872_v46 = vpack.c.bf16 %v764_v12, %v763_v9 }
 0x267   :  { %v753_v47 = vadd.f32 %v2851_v50, %v703_v19  ;;  %v706_v48 = vadd.f32 %v2069_v27, %v587_v20  ;;  %v2335_v19 = vld [vmem:[#allocation7 + $0x18] sm:$0xff]  }
 0x268   :  { %v751_v53 = vadd.f32 %v2851_v50, %v695_v23  ;;  %v698_v54 = vadd.f32 %v697_v29, %v585_v28  ;;  %2094 = vmatprep.mubr.bf16.mxu1 %v2872_v46 }
 0x269   :  { %v754_v24 = vadd.f32 %v2851_v50, %v706_v48  ;;  %2095 = vmatmul.mubr.bf16.vlgmr.msra.gmra.mrb[16].mxu1 %v2866_v18  ;;  %v769_v56 = vmax.f32 %v753_v47, 0.0 }
 0x26a   :  { %v752_v26 = vadd.f32 %v2851_v50, %v698_v54  ;;  %v2040_v55 = vpop.f32.mrb[8].mxu1  ;;  %2143 = vmatpush3.bf16.msra.mxu1 %v2812_v30  ;;  %v767_v29 = vmax.f32 %v751_v53, 0.0  ;;  %v2336_v53 = vld [vmem:[#allocation7 + $0x20] sm:$0xff]   ;;  %v2905_v54 = vpop.permute.xlu1 %577 }
 0x26b   :  { %v770_v57 = vmax.f32 %v754_v24, 0.0  ;;  %v590_v27 = vmul.f32 %v2040_v55, %v2869_v22  ;;  %v469_v58 = vpop.f32.mrb[9].mxu1  ;;  %2144 = vmatprep.subr.bf16.mxu1 %v2333_v51 }
 0x26c   :  { %v768_v62 = vmax.f32 %v752_v26, 0.0  ;;  %v588_v63 = vmul.f32 %v2857_v60, %v469_v58  ;;  %v2041_v1 = vpop.f32.mrb[10].mxu1 }
 0x26d   :  { %v719_v2 = vadd.f32 %v2814_v31, %v590_v27  ;;  %v591_v3 = vmul.f32 %v2041_v1, %v2875_v52  ;;  %v472_v4 = vpop.f32.mrb[11].mxu1  ;;  %v2889_v30 = vpack.c.bf16 %v770_v57, %v769_v56 }
 0x26e   :  { %v711_v8 = vadd.f32 %v2817_v32, %v588_v63  ;;  %v589_v9 = vmul.f32 %v2861_v0, %v472_v4  ;;  %2145 = vmatpush3.bf16.msra.mxu1 %v2333_v51  ;;  %v781_v12 = vpack.c.bf16 %v768_v62, %v767_v29  ;;  %v2901_v32 = vpop.permute.xlu0 %572 }
 0x26f   :  { %v757_v13 = vadd.f32 %v2851_v50, %v719_v2  ;;  %v722_v14 = vadd.f32 %v2819_v33, %v591_v3  ;;  %2146 = vmatprep.subr.bf16.mxu1 %v2334_v59  ;;  %v2337_v2 = vld [vmem:[#allocation7 + $0x28] sm:$0xff]  }
 0x270   :  { %v755_v31 = vadd.f32 %v2851_v50, %v711_v8  ;;  %v714_v20 = vadd.f32 %v2821_v34, %v589_v9  ;;  %2098 = vmatprep.mubr.bf16.mxu1 %v781_v12 }
 0x271   :  { %v758_v21 = vadd.f32 %v2851_v50, %v722_v14  ;;  %2099 = vmatmul.mubr.bf16.gmra.mrb[20].mxu1 %v2889_v30  ;;  %v773_v47 = vmax.f32 %v757_v13, 0.0  ;;  %v2338_v13 = vld [vmem:[#allocation7 + $0x30] sm:$0xff]  }
 0x272   :  { %v756_v23 = vadd.f32 %v2851_v50, %v714_v20  ;;  %v2044_v28 = vpop.f32.mrb[12].mxu1  ;;  %2147 = vmatpush3.bf16.msra.mxu1 %v2334_v59  ;;  %v771_v34 = vmax.f32 %v755_v31, 0.0  ;;  %v2339_v20 = vld [vmem:[#allocation7 + $0x38] sm:$0xff]  }
 0x273   :  { %v774_v48 = vmax.f32 %v758_v21, 0.0  ;;  %v594_v33 = vmul.f32 %v2044_v28, %v2901_v32  ;;  %v485_v51 = vpop.f32.mrb[13].mxu1  ;;  %2148 = vmatprep.subr.bf16.mxu1 %v2335_v19 }
 0x274   :  { %v772_v24 = vmax.f32 %v756_v23, 0.0  ;;  %v592_v26 = vmul.f32 %v2884_v61, %v485_v51  ;;  %v2045_v55 = vpop.f32.mrb[14].mxu1 }
 0x275   :  { %v735_v56 = vadd.f32 %v2823_v35, %v594_v33  ;;  %v595_v57 = vmul.f32 %v2045_v55, %v2905_v54  ;;  %v488_v27 = vpop.f32.mrb[15].mxu1  ;;  %v784_v58 = vpack.c.bf16 %v774_v48, %v773_v47 }
 0x276   :  { %v727_v59 = vadd.f32 %v2825_v36, %v592_v26  ;;  %v593_v29 = vmul.f32 %v2891_v7, %v488_v27  ;;  %2149 = vmatpush3.bf16.msra.mxu1 %v2335_v19  ;;  %v783_v62 = vpack.c.bf16 %v772_v24, %v771_v34 }
 0x277   :  { %v761_v63 = vadd.f32 %v2851_v50, %v735_v56  ;;  %v738_v1 = vadd.f32 %v2827_v37, %v595_v57  ;;  %2150 = vmatprep.subr.bf16.mxu1 %v2336_v53 }
 0x278   :  { %v759_v3 = vadd.f32 %v2851_v50, %v727_v59  ;;  %v730_v35 = vadd.f32 %v2829_v38, %v593_v29  ;;  %2102 = vmatprep.mubr.bf16.mxu1 %v783_v62 }
 0x279   :  { %v762_v4 = vadd.f32 %v2851_v50, %v738_v1  ;;  %2103 = vmatmul.mubr.bf16.gmra.mrb[24].mxu1 %v784_v58  ;;  %v777_v8 = vmax.f32 %v761_v63, 0.0 }
 0x27a   :  { %v760_v36 = vadd.f32 %v2851_v50, %v730_v35  ;;  %2151 = vmatpush3.bf16.msra.mxu1 %v2336_v53  ;;  %v775_v14 = vmax.f32 %v759_v3, 0.0  ;;  %v2341_v3 = vld [vmem:[#allocation11 + $0x8] sm:$0xff]  }
 0x27b   :  { %v778_v9 = vmax.f32 %v762_v4, 0.0  ;;  %2152 = vmatprep.subr.bf16.mxu1 %v2337_v2  ;;  %v2342_v4 = vld [vmem:[#allocation11 + $0x10] sm:$0xff]  }
 0x27c   :  { %v776_v19 = vmax.f32 %v760_v36, 0.0 }
 0x27d   :  { %v786_v37 = vpack.c.bf16 %v778_v9, %v777_v8 }
 0x27e   :  { %2153 = vmatpush3.bf16.msra.mxu1 %v2337_v2  ;;  %v785_v31 = vpack.c.bf16 %v776_v19, %v775_v14  ;;  %v2344_v19 = vld [vmem:[#allocation11 + $0x20] sm:$0xff]  }
 0x27f   :  { %2154 = vmatprep.subr.bf16.mxu1 %v2338_v13 }
 0x280   :  { %2106 = vmatprep.mubr.bf16.mxu1 %v785_v31 }
 0x281   :  { %2107 = vmatmul.mubr.bf16.gmra.mrb[28].mxu1 %v786_v37 }
 0x282   :  { %2155 = vmatpush3.bf16.msra.mxu1 %v2338_v13  ;;  %2158 = vmatprep.mubr.bf16.mxu1 %v2872_v46  ;;  %v2343_v13 = vld [vmem:[#allocation11 + $0x18] sm:$0xff]  }
 0x283   :  { %2156 = vmatprep.subr.bf16.mxu1 %v2339_v20 }
 0x286   :  { %2157 = vmatpush3.bf16.msra.mxu1 %v2339_v20 }
 0x289   :  { %2159 = vmatmul.mubr.bf16.vlgmr.msra.gmra.mrb[32].mxu1 %v2866_v18 }
 0x28a   :  { %2162 = vmatprep.mubr.bf16.mxu1 %v781_v12 }
 0x291   :  { %2163 = vmatmul.mubr.bf16.gmra.mrb[36].mxu1 %v2889_v30 }
 0x292   :  { %2166 = vmatprep.mubr.bf16.mxu1 %v783_v62  ;;  %v2340_v62 = vld [vmem:[#allocation11] sm:$0xff]  }
 0x299   :  { %2167 = vmatmul.mubr.bf16.gmra.mrb[40].mxu1 %v784_v58 }
 0x29a   :  { %2170 = vmatprep.mubr.bf16.mxu1 %v785_v31 }
 0x2a1   :  { %2171 = vmatmul.mubr.bf16.gmra.mrb[44].mxu1 %v786_v37 }
 0x2a2   :  { %2222 = vmatprep.mubr.bf16.mxu1 %v2738_v25 }
 0x33c   :  { %v2096_v38 = vpop.f32.mrb[16].mxu1 }
 0x33d   :  { %v902_v50 = vpop.f32.mrb[17].mxu1 }
 0x33e   :  { %v2097_v21 = vpop.f32.mrb[18].mxu1 }
 0x33f   :  { %v966_v23 = vpack.c.bf16 %v2097_v21, %v2096_v38  ;;  %v905_v28 = vpop.f32.mrb[19].mxu1 }
 0x340   :  { %v965_v47 = vpack.c.bf16 %v905_v28, %v902_v50  ;;  %v2345_v28 = vld [vmem:[#allocation11 + $0x28] sm:$0xff]  }
 0x342   :  { %2110 = vmatprep.subr.bf16.mxu0 %v965_v47 }
 0x343   :  { %2111 = vmatpush3.bf16.msra.mxu0 %v965_v47  ;;  %v2346_v47 = vld [vmem:[#allocation11 + $0x30] sm:$0xff]  }
 0x344   :  { %v2100_v46 = vpop.f32.mrb[20].mxu1  ;;  %2112 = vmatprep.subr.bf16.mxu0 %v966_v23 }
 0x345   :  { %v918_v18 = vpop.f32.mrb[21].mxu1 }
 0x346   :  { %v2101_v12 = vpop.f32.mrb[22].mxu1 }
 0x347   :  { %v968_v48 = vpack.c.bf16 %v2101_v12, %v2100_v46  ;;  %v921_v30 = vpop.f32.mrb[23].mxu1  ;;  %2113 = vmatpush3.bf16.msra.mxu0 %v966_v23  ;;  %v2347_v46 = vld [vmem:[#allocation11 + $0x38] sm:$0xff]  }
 0x348   :  { %v967_v33 = vpack.c.bf16 %v921_v30, %v918_v18  ;;  %v2953_v18 = vld [vmem:[#allocation10] sm:$0xff]  }
 0x34a   :  { %2114 = vmatprep.subr.bf16.mxu0 %v967_v33 }
 0x34b   :  { %2115 = vmatpush3.bf16.msra.mxu0 %v967_v33  ;;  %v2960_v33 = vld [vmem:[%s3145_s8] ss:$0 sm:$0xff] }
 0x34c   :  { %v2104_v51 = vpop.f32.mrb[24].mxu1  ;;  %2116 = vmatprep.subr.bf16.mxu0 %v968_v48 }
 0x34d   :  { %v934_v25 = vpop.f32.mrb[25].mxu1 }
 0x34e   :  { %v2105_v53 = vpop.f32.mrb[26].mxu1 }
 0x34f   :  { %v970_v34 = vpack.c.bf16 %v2105_v53, %v2104_v51  ;;  %v937_v24 = vpop.f32.mrb[27].mxu1  ;;  %2117 = vmatpush3.bf16.msra.mxu0 %v968_v48 }
 0x350   :  { %v969_v26 = vpack.c.bf16 %v937_v24, %v934_v25 }
 0x352   :  { %2118 = vmatprep.subr.bf16.mxu0 %v969_v26 }
 0x353   :  { %2119 = vmatpush3.bf16.msra.mxu0 %v969_v26 }
 0x354   :  { %v2108_v55 = vpop.f32.mrb[28].mxu1  ;;  %2120 = vmatprep.subr.bf16.mxu0 %v970_v34 }
 0x355   :  { %v950_v56 = vpop.f32.mrb[29].mxu1 }
 0x356   :  { %v2109_v57 = vpop.f32.mrb[30].mxu1 }
 0x357   :  { %v972_v27 = vpack.c.bf16 %v2109_v57, %v2108_v55  ;;  %v953_v58 = vpop.f32.mrb[31].mxu1  ;;  %2121 = vmatpush3.bf16.msra.mxu0 %v970_v34 }
 0x358   :  { %v971_v59 = vpack.c.bf16 %v953_v58, %v950_v56 }
 0x35a   :  { %2122 = vmatprep.subr.bf16.mxu0 %v971_v59 }
 0x35b   :  { %2123 = vmatpush3.bf16.msra.mxu0 %v971_v59 }
 0x35c   :  { %2124 = vmatprep.subr.bf16.mxu0 %v972_v27  ;;  %v2160_v29 = vpop.f32.mrb[32].mxu1 }
 0x35d   :  { %v1168_v63 = vpop.f32.mrb[33].mxu1 }
 0x35e   :  { %v2161_v1 = vpop.f32.mrb[34].mxu1 }
 0x35f   :  { %2125 = vmatpush3.bf16.msra.mxu0 %v972_v27  ;;  %v1171_v2 = vpop.f32.mrb[35].mxu1 }
 0x360   :  { %2174 = vmatprep.subr.bf16.mxu0 %v2340_v62 }
 0x362   :  { %2127 = vmatmul.mubr.bf16.vlgmr.msra.gmra.mrb[32].mxu0 %v2791_v5 }
 0x363   :  { %2130 = vmatprep.mubr.bf16.mxu0 %v2793_v6  ;;  %2175 = vmatpush3.bf16.msra.mxu0 %v2340_v62 }
 0x364   :  { %v2924_v35 = vpop.f32.mrb[36].mxu1  ;;  %2176 = vmatprep.subr.bf16.mxu0 %v2341_v3 }
 0x365   :  { %v2926_v36 = vpop.f32.mrb[37].mxu1 }
 0x366   :  { %v2928_v8 = vpop.f32.mrb[38].mxu1 }
 0x367   :  { %v2930_v9 = vpop.f32.mrb[39].mxu1  ;;  %2177 = vmatpush3.bf16.msra.mxu0 %v2341_v3 }
 0x368   :  { %2178 = vmatprep.subr.bf16.mxu0 %v2342_v4 }
 0x36a   :  { %2131 = vmatmul.mubr.bf16.gmra.mrb[36].mxu0 %v2797_v10 }
 0x36b   :  { %2134 = vmatprep.mubr.bf16.mxu0 %v2799_v11  ;;  %2179 = vmatpush3.bf16.msra.mxu0 %v2342_v4 }
 0x36c   :  { %v2934_v14 = vpop.f32.mrb[40].mxu1  ;;  %2180 = vmatprep.subr.bf16.mxu0 %v2343_v13 }
 0x36d   :  { %v2936_v37 = vpop.f32.mrb[41].mxu1 }
 0x36e   :  { %v2938_v31 = vpop.f32.mrb[42].mxu1 }
 0x36f   :  { %v2940_v20 = vpop.f32.mrb[43].mxu1  ;;  %2181 = vmatpush3.bf16.msra.mxu0 %v2343_v13 }
 0x370   :  { %2182 = vmatprep.subr.bf16.mxu0 %v2344_v19 }
 0x372   :  { %2135 = vmatmul.mubr.bf16.gmra.mrb[40].mxu0 %v2803_v15 }
 0x373   :  { %2138 = vmatprep.mubr.bf16.mxu0 %v2805_v16  ;;  %2183 = vmatpush3.bf16.msra.mxu0 %v2344_v19 }
 0x374   :  { %v2944_v38 = vpop.f32.mrb[44].mxu1  ;;  %2184 = vmatprep.subr.bf16.mxu0 %v2345_v28 }
 0x375   :  { %v2946_v50 = vpop.f32.mrb[45].mxu1 }
 0x376   :  { %v2948_v21 = vpop.f32.mrb[46].mxu1 }
 0x377   :  { %v2950_v23 = vpop.f32.mrb[47].mxu1  ;;  %2185 = vmatpush3.bf16.msra.mxu0 %v2345_v28 }
 0x378   :  { %2186 = vmatprep.subr.bf16.mxu0 %v2346_v47 }
 0x37a   :  { %2139 = vmatmul.mubr.bf16.gmra.mrb[44].mxu0 %v2809_v17 }
 0x37b   :  { %2187 = vmatpush3.bf16.msra.mxu0 %v2346_v47 }
 0x37c   :  { %2188 = vmatprep.subr.bf16.mxu0 %v2347_v46 }
 0x37f   :  { %2189 = vmatpush3.bf16.msra.mxu0 %v2347_v46 }
 0x380   :  { %2238 = vmatprep.subr.bf16.mxu0 %v2953_v18 }
 0x435   :  { %v2128_v12 = vpop.f32.mrb[32].mxu0 }
 0x436   :  { %v1072_v48 = vmul.f32 %v2128_v12, %v2833_v40  ;;  %v1007_v30 = vpop.f32.mrb[33].mxu0 }
 0x437   :  { %v1070_v51 = vmul.f32 %v1007_v30, %v2831_v39  ;;  %v2129_v25 = vpop.f32.mrb[34].mxu0 }
 0x438   :  { %v1177_v53 = vadd.f32 %v2160_v29, %v1072_v48  ;;  %v1073_v34 = vmul.f32 %v2129_v25, %v2837_v42  ;;  %v1010_v24 = vpop.f32.mrb[35].mxu0 }
 0x439   :  { %v1169_v26 = vadd.f32 %v1168_v63, %v1070_v51  ;;  %v1071_v55 = vmul.f32 %v1010_v24, %v2835_v41  ;;  %v2981_v24 = vld [vmem:[#allocation10 + $0x8] sm:$0xff]  }
 0x43a   :  { %v1239_v56 = vadd.f32 %v2960_v33, %v1177_v53  ;;  %v1180_v57 = vadd.f32 %v2161_v1, %v1073_v34 }
 0x43b   :  { %v1237_v27 = vadd.f32 %v2960_v33, %v1169_v26  ;;  %v1172_v58 = vadd.f32 %v1171_v2, %v1071_v55 }
 0x43c   :  { %v1240_v59 = vadd.f32 %v2960_v33, %v1180_v57  ;;  %v1255_v4 = vmax.f32 %v1239_v56, 0.0 }
 0x43d   :  { %v1238_v62 = vadd.f32 %v2960_v33, %v1172_v58  ;;  %v2132_v3 = vpop.f32.mrb[36].mxu0  ;;  %v1253_v28 = vmax.f32 %v1237_v27, 0.0 }
 0x43e   :  { %v1256_v13 = vmax.f32 %v1240_v59, 0.0  ;;  %v1076_v29 = vmul.f32 %v2132_v3, %v2843_v45  ;;  %v1023_v19 = vpop.f32.mrb[37].mxu0  ;;  %v2992_v59 = vld [vmem:[#allocation10 + $0x10] sm:$0xff]  }
 0x43f   :  { %v1254_v63 = vmax.f32 %v1238_v62, 0.0  ;;  %v1074_v47 = vmul.f32 %v1023_v19, %v2839_v43  ;;  %v2133_v46 = vpop.f32.mrb[38].mxu0 }
 0x440   :  { %v2971_v12 = vpack.c.bf16 %v1256_v13, %v1255_v4  ;;  %v1193_v1 = vadd.f32 %v2924_v35, %v1076_v29  ;;  %v1077_v2 = vmul.f32 %v2133_v46, %v2846_v49  ;;  %v1026_v48 = vpop.f32.mrb[39].mxu0 }
 0x441   :  { %v1185_v30 = vadd.f32 %v2926_v36, %v1074_v47  ;;  %v1075_v51 = vmul.f32 %v1026_v48, %v2841_v44  ;;  %v2977_v25 = vpack.c.bf16 %v1254_v63, %v1253_v28  ;;  %v3005_v48 = vld [vmem:[#allocation10 + $0x18] sm:$0xff]  }
 0x442   :  { %v1243_v53 = vadd.f32 %v2960_v33, %v1193_v1  ;;  %v1196_v34 = vadd.f32 %v2928_v8, %v1077_v2 }
 0x443   :  { %v1241_v26 = vadd.f32 %v2960_v33, %v1185_v30  ;;  %v1188_v55 = vadd.f32 %v2930_v9, %v1075_v51  ;;  %2190 = vmatprep.mubr.bf16.mxu0 %v2977_v25 }
 0x444   :  { %v1244_v35 = vadd.f32 %v2960_v33, %v1196_v34  ;;  %2191 = vmatmul.mubr.bf16.vlgmr.msra.gmra.mrb[48].mxu0 %v2971_v12  ;;  %v1259_v57 = vmax.f32 %v1243_v53, 0.0 }
 0x445   :  { %v1242_v36 = vadd.f32 %v2960_v33, %v1188_v55  ;;  %v2136_v56 = vpop.f32.mrb[40].mxu0  ;;  %2239 = vmatpush3.bf16.msra.mxu0 %v2953_v18  ;;  %v1257_v9 = vmax.f32 %v1241_v26, 0.0 }
 0x446   :  { %v1260_v27 = vmax.f32 %v1244_v35, 0.0  ;;  %v1080_v8 = vmul.f32 %v2136_v56, %v2869_v22  ;;  %v1039_v58 = vpop.f32.mrb[41].mxu0  ;;  %2240 = vmatprep.subr.bf16.mxu0 %v2981_v24  ;;  %v3015_v35 = vld [vmem:[#allocation10 + $0x20] sm:$0xff]  }
 0x447   :  { %v1258_v62 = vmax.f32 %v1242_v36, 0.0  ;;  %v1078_v3 = vmul.f32 %v1039_v58, %v2857_v60  ;;  %v2137_v4 = vpop.f32.mrb[42].mxu0 }
 0x448   :  { %v1209_v13 = vadd.f32 %v2934_v14, %v1080_v8  ;;  %v1081_v29 = vmul.f32 %v2137_v4, %v2875_v52  ;;  %v1042_v19 = vpop.f32.mrb[43].mxu0  ;;  %v2997_v28 = vpack.c.bf16 %v1260_v27, %v1259_v57 }
 0x449   :  { %v1201_v63 = vadd.f32 %v2936_v37, %v1078_v3  ;;  %v1079_v47 = vmul.f32 %v1042_v19, %v2861_v0  ;;  %2241 = vmatpush3.bf16.msra.mxu0 %v2981_v24  ;;  %v1271_v46 = vpack.c.bf16 %v1258_v62, %v1257_v9 }
 0x44a   :  { %v1247_v1 = vadd.f32 %v2960_v33, %v1209_v13  ;;  %v1212_v2 = vadd.f32 %v2938_v31, %v1081_v29  ;;  %2242 = vmatprep.subr.bf16.mxu0 %v2992_v59 }
 0x44b   :  { %v1245_v14 = vadd.f32 %v2960_v33, %v1201_v63  ;;  %v1204_v30 = vadd.f32 %v2940_v20, %v1079_v47  ;;  %2194 = vmatprep.mubr.bf16.mxu0 %v1271_v46 }
 0x44c   :  { %v1248_v37 = vadd.f32 %v2960_v33, %v1212_v2  ;;  %2195 = vmatmul.mubr.bf16.gmra.mrb[52].mxu0 %v2997_v28  ;;  %v1263_v34 = vmax.f32 %v1247_v1, 0.0  ;;  %v3040_v2 = vld [vmem:[#allocation10 + $0x30] sm:$0xff]  }
 0x44d   :  { %v1246_v51 = vadd.f32 %v2960_v33, %v1204_v30  ;;  %v2140_v53 = vpop.f32.mrb[44].mxu0  ;;  %2243 = vmatpush3.bf16.msra.mxu0 %v2992_v59  ;;  %v1261_v20 = vmax.f32 %v1245_v14, 0.0 }
 0x44e   :  { %v1264_v31 = vmax.f32 %v1248_v37, 0.0  ;;  %v1084_v26 = vmul.f32 %v2140_v53, %v2901_v32  ;;  %v1055_v55 = vpop.f32.mrb[45].mxu0  ;;  %2244 = vmatprep.subr.bf16.mxu0 %v3005_v48 }
 0x44f   :  { %v1262_v36 = vmax.f32 %v1246_v51, 0.0  ;;  %v1082_v56 = vmul.f32 %v1055_v55, %v2884_v61  ;;  %v2141_v57 = vpop.f32.mrb[46].mxu0  ;;  %v3048_v51 = vld [vmem:[#allocation10 + $0x38] sm:$0xff]  }
 0x450   :  { %v1225_v27 = vadd.f32 %v2944_v38, %v1084_v26  ;;  %v1085_v8 = vmul.f32 %v2141_v57, %v2905_v54  ;;  %v1058_v58 = vpop.f32.mrb[47].mxu0  ;;  %v3020_v9 = vpack.c.bf16 %v1264_v31, %v1263_v34  ;;  %v3030_v38 = vld [vmem:[#allocation10 + $0x28] sm:$0xff]  }
 0x451   :  { %v1217_v62 = vadd.f32 %v2946_v50, %v1082_v56  ;;  %v1083_v3 = vmul.f32 %v1058_v58, %v2891_v7  ;;  %2245 = vmatpush3.bf16.msra.mxu0 %v3005_v48  ;;  %v3025_v4 = vpack.c.bf16 %v1262_v36, %v1261_v20 }
 0x452   :  { %v1251_v13 = vadd.f32 %v2960_v33, %v1225_v27  ;;  %v1228_v29 = vadd.f32 %v2948_v21, %v1085_v8  ;;  %2246 = vmatprep.subr.bf16.mxu0 %v3015_v35 }
 0x453   :  { %v1249_v19 = vadd.f32 %v2960_v33, %v1217_v62  ;;  %v1220_v63 = vadd.f32 %v2950_v23, %v1083_v3  ;;  %2198 = vmatprep.mubr.bf16.mxu0 %v3025_v4 }
 0x454   :  { %v1252_v50 = vadd.f32 %v2960_v33, %v1228_v29  ;;  %2199 = vmatmul.mubr.bf16.gmra.mrb[56].mxu0 %v3020_v9  ;;  %v1267_v1 = vmax.f32 %v1251_v13, 0.0 }
 0x455   :  { %v1250_v47 = vadd.f32 %v2960_v33, %v1220_v63  ;;  %2247 = vmatpush3.bf16.msra.mxu0 %v3015_v35  ;;  %v1265_v14 = vmax.f32 %v1249_v19, 0.0 }
 0x456   :  { %v1268_v21 = vmax.f32 %v1252_v50, 0.0  ;;  %2248 = vmatprep.subr.bf16.mxu0 %v3030_v38 }
 0x457   :  { %v1266_v30 = vmax.f32 %v1250_v47, 0.0 }
 0x458   :  { %v3042_v37 = vpack.c.bf16 %v1268_v21, %v1267_v1 }
 0x459   :  { %2249 = vmatpush3.bf16.msra.mxu0 %v3030_v38  ;;  %v3045_v23 = vpack.c.bf16 %v1266_v30, %v1265_v14 }
 0x45a   :  { %2250 = vmatprep.subr.bf16.mxu0 %v3040_v2 }
 0x45b   :  { %2202 = vmatprep.mubr.bf16.mxu0 %v3045_v23 }
 0x45c   :  { %2203 = vmatmul.mubr.bf16.gmra.mrb[60].mxu0 %v3042_v37 }
 0x45d   :  { %2251 = vmatpush3.bf16.msra.mxu0 %v3040_v2  ;;  %2254 = vmatprep.mubr.bf16.mxu0 %v2977_v25 }
 0x45e   :  { %2252 = vmatprep.subr.bf16.mxu0 %v3048_v51 }
 0x461   :  { %2253 = vmatpush3.bf16.msra.mxu0 %v3048_v51 }
 0x464   :  { %2255 = vmatmul.mubr.bf16.vlgmr.msra.gmra.mrb[64].mxu0 %v2971_v12 }
 0x465   :  { %2258 = vmatprep.mubr.bf16.mxu0 %v1271_v46 }
 0x46c   :  { %2259 = vmatmul.mubr.bf16.gmra.mrb[68].mxu0 %v2997_v28 }
 0x517   :  { %v2192_v33 = vpop.f32.mrb[48].mxu0 }
 0x518   :  { %v1392_v53 = vpop.f32.mrb[49].mxu0 }
 0x519   :  { %v2193_v34 = vpop.f32.mrb[50].mxu0 }
 0x51a   :  { %v1456_v31 = vpack.c.bf16 %v2193_v34, %v2192_v33  ;;  %v1395_v26 = vpop.f32.mrb[51].mxu0 }
 0x51b   :  { %v1455_v55 = vpack.c.bf16 %v1395_v26, %v1392_v53 }
 0x51d   :  { %2206 = vmatprep.subr.bf16.mxu1 %v1455_v55 }
 0x51e   :  { %2207 = vmatpush3.bf16.msra.mxu1 %v1455_v55 }
 0x51f   :  { %v2196_v20 = vpop.f32.mrb[52].mxu0  ;;  %2208 = vmatprep.subr.bf16.mxu1 %v1456_v31 }
 0x520   :  { %v1408_v25 = vpop.f32.mrb[53].mxu0 }
 0x521   :  { %v2197_v36 = vpop.f32.mrb[54].mxu0 }
 0x522   :  { %v1458_v56 = vpack.c.bf16 %v2197_v36, %v2196_v20  ;;  %v1411_v57 = vpop.f32.mrb[55].mxu0  ;;  %2209 = vmatpush3.bf16.msra.mxu1 %v1456_v31 }
 0x523   :  { %v1457_v27 = vpack.c.bf16 %v1411_v57, %v1408_v25 }
 0x525   :  { %2210 = vmatprep.subr.bf16.mxu1 %v1457_v27 }
 0x526   :  { %2211 = vmatpush3.bf16.msra.mxu1 %v1457_v27 }
 0x527   :  { %v2200_v12 = vpop.f32.mrb[56].mxu0  ;;  %2212 = vmatprep.subr.bf16.mxu1 %v1458_v56 }
 0x528   :  { %v1424_v28 = vpop.f32.mrb[57].mxu0 }
 0x529   :  { %v2201_v46 = vpop.f32.mrb[58].mxu0 }
 0x52a   :  { %v1460_v8 = vpack.c.bf16 %v2201_v46, %v2200_v12  ;;  %v1427_v58 = vpop.f32.mrb[59].mxu0  ;;  %2213 = vmatpush3.bf16.msra.mxu1 %v1458_v56 }
 0x52b   :  { %v1459_v62 = vpack.c.bf16 %v1427_v58, %v1424_v28 }
 0x52d   :  { %2214 = vmatprep.subr.bf16.mxu1 %v1459_v62 }
 0x52e   :  { %2215 = vmatpush3.bf16.msra.mxu1 %v1459_v62 }
 0x52f   :  { %v2204_v3 = vpop.f32.mrb[60].mxu0  ;;  %2216 = vmatprep.subr.bf16.mxu1 %v1460_v8 }
 0x530   :  { %v1440_v13 = vpop.f32.mrb[61].mxu0 }
 0x531   :  { %v2205_v29 = vpop.f32.mrb[62].mxu0 }
 0x532   :  { %v1462_v19 = vpack.c.bf16 %v2205_v29, %v2204_v3  ;;  %v1443_v63 = vpop.f32.mrb[63].mxu0  ;;  %2217 = vmatpush3.bf16.msra.mxu1 %v1460_v8 }
 0x533   :  { %v1461_v50 = vpack.c.bf16 %v1443_v63, %v1440_v13 }
 0x535   :  { %2218 = vmatprep.subr.bf16.mxu1 %v1461_v50 }
 0x536   :  { %2219 = vmatpush3.bf16.msra.mxu1 %v1461_v50 }
 0x537   :  { %2220 = vmatprep.subr.bf16.mxu1 %v1462_v19  ;;  %v2256_v47 = vpop.f32.mrb[64].mxu0 }
 0x538   :  { %v1658_v1 = vpop.f32.mrb[65].mxu0 }
 0x539   :  { %v2257_v21 = vpop.f32.mrb[66].mxu0 }
 0x53a   :  { %2221 = vmatpush3.bf16.msra.mxu1 %v1462_v19  ;;  %v1661_v14 = vpop.f32.mrb[67].mxu0 }
 0x53b   :  { %2270 = vmatprep.subr.bf16.mxu1 %v2953_v18 }
 0x53d   :  { %2223 = vmatmul.mubr.bf16.vlgmr.msra.gmra.mrb[48].mxu1 %v2791_v5 }
 0x53e   :  { %2278 = vmatpush3.bf16.msra.mxu1 %v2953_v18  ;;  %2226 = vmatprep.mubr.bf16.mxu1 %v2793_v6 }
 0x53f   :  { %v2260_v30 = vpop.f32.mrb[68].mxu0  ;;  %2271 = vmatprep.subr.bf16.mxu1 %v2981_v24 }
 0x540   :  { %v1674_v33 = vpop.f32.mrb[69].mxu0 }
 0x541   :  { %v2261_v53 = vpop.f32.mrb[70].mxu0 }
 0x542   :  { %2279 = vmatpush3.bf16.msra.mxu1 %v2981_v24  ;;  %v1677_v34 = vpop.f32.mrb[71].mxu0 }
 0x543   :  { %2272 = vmatprep.subr.bf16.mxu1 %v2992_v59 }
 0x545   :  { %2227 = vmatmul.mubr.bf16.gmra.mrb[52].mxu1 %v2797_v10 }
 0x546   :  { %2280 = vmatpush3.bf16.msra.mxu1 %v2992_v59  ;;  %2230 = vmatprep.mubr.bf16.mxu1 %v2799_v11  ;;  %v3089_v11 = vld [vmem:[%s3148_s11] ss:$0 sm:$0xff]  ;;  %s2531_s11 = smov [#allocation13]  }
 0x547   :  { %2273 = vmatprep.subr.bf16.mxu1 %v3005_v48  ;;  %s1764_s26 = sshll.u32 %s2531_s11, 4  ;;  %s1765_s26 = int_to_ptr.vmem [resolvable:$true] %s1764_s26 }
 0x548   :  { %s2488_s9 = scalar_lea.vmem %s1765_s26, 2048  ;;  %p2493_p7 = scmp.lt.s32.totalorder %s1765_s26, %s1765_s26 }
 0x549   :  { %p2489_p6 = scmp.ne.s32.totalorder %s1765_s26, %s2488_s9  ;;  %p2494_p8 = scmp.lt.s32.totalorder %s2488_s9, %s2488_s9 }
 0x54a   :  { %2281 = vmatpush3.bf16.msra.mxu1 %v3005_v48 }
 0x54b   :  { %2274 = vmatprep.subr.bf16.mxu1 %v3015_v35  ;;  %p2495_p9 = por %p2494_p8, %p2493_p7 }
 0x54d   :  { %2231 = vmatmul.mubr.bf16.gmra.mrb[56].mxu1 %v2803_v15  ;;  %p2496_p10 = pnand %p2495_p9, %p2489_p6 }
 0x54e   :  { %2282 = vmatpush3.bf16.msra.mxu1 %v3015_v35  ;;  %2234 = vmatprep.mubr.bf16.mxu1 %v2805_v16 }
 0x54f   :  { %2275 = vmatprep.subr.bf16.mxu1 %v3030_v38 }
 0x552   :  { %2283 = vmatpush3.bf16.msra.mxu1 %v3030_v38 }
 0x553   :  { %2276 = vmatprep.subr.bf16.mxu1 %v3040_v2 }
 0x555   :  { %2235 = vmatmul.mubr.bf16.gmra.mrb[60].mxu1 %v2809_v17 }
 0x556   :  { %2284 = vmatpush3.bf16.msra.mxu1 %v3040_v2  ;;  %2262 = vmatprep.mubr.bf16.mxu1 %v3025_v4 }
 0x557   :  { %2277 = vmatprep.subr.bf16.mxu1 %v3048_v51 }
 0x55a   :  { %2285 = vmatpush3.bf16.msra.mxu1 %v3048_v51 }
 0x55d   :  { %2263 = vmatmul.mubr.bf16.vlgmr.msra.gmra.mrb[64].mxu1 %v3020_v9 }
 0x55e   :  { %2266 = vmatprep.mubr.bf16.mxu1 %v3045_v23 }
 0x565   :  { %2267 = vmatmul.mubr.bf16.gmra.mrb[68].mxu1 %v3042_v37 }
 0x610   :  { %v2224_v5 = vpop.f32.mrb[48].mxu1 }
 0x611   :  { %v1562_v6 = vmul.f32 %v2224_v5, %v2833_v40  ;;  %v1497_v10 = vpop.f32.mrb[49].mxu1 }
 0x612   :  { %v1560_v15 = vmul.f32 %v1497_v10, %v2831_v39  ;;  %v2225_v16 = vpop.f32.mrb[50].mxu1 }
 0x613   :  { %v1667_v17 = vadd.f32 %v2256_v47, %v1562_v6  ;;  %v1563_v18 = vmul.f32 %v2225_v16, %v2837_v42  ;;  %v1500_v24 = vpop.f32.mrb[51].mxu1 }
 0x614   :  { %v1659_v59 = vadd.f32 %v1658_v1, %v1560_v15  ;;  %v1561_v48 = vmul.f32 %v1500_v24, %v2835_v41 }
 0x615   :  { %v1729_v35 = vadd.f32 %v3089_v11, %v1667_v17  ;;  %v1670_v9 = vadd.f32 %v2257_v21, %v1563_v18 }
 0x616   :  { %v1727_v40 = vadd.f32 %v3089_v11, %v1659_v59  ;;  %v1662_v4 = vadd.f32 %v1661_v14, %v1561_v48 }
 0x617   :  { %1745 = vst [vmem:[#allocation13 + $0x10] sm:$0xff] %v1729_v35  ;;  %v1730_v38 = vadd.f32 %v3089_v11, %v1670_v9 }
 0x618   :  { %1743 = vst [vmem:[#allocation13] sm:$0xff] %v1727_v40  ;;  %v1728_v39 = vadd.f32 %v3089_v11, %v1662_v4  ;;  %v2228_v2 = vpop.f32.mrb[52].mxu1 }
 0x619   :  { %1746 = vst [vmem:[#allocation13 + $0x18] sm:$0xff] %v1730_v38  ;;  %v1566_v42 = vmul.f32 %v2228_v2, %v2843_v45  ;;  %v1513_v37 = vpop.f32.mrb[53].mxu1 }
 0x61a   :  { %1744 = vst [vmem:[#allocation13 + $0x8] sm:$0xff] %v1728_v39  ;;  %v1564_v41 = vmul.f32 %v1513_v37, %v2839_v43  ;;  %v2229_v23 = vpop.f32.mrb[54].mxu1 }
 0x61b   :  { %v1683_v51 = vadd.f32 %v2260_v30, %v1566_v42  ;;  %v1567_v31 = vmul.f32 %v2229_v23, %v2846_v49  ;;  %v1516_v26 = vpop.f32.mrb[55].mxu1 }
 0x61c   :  { %v1675_v55 = vadd.f32 %v1674_v33, %v1564_v41  ;;  %v1565_v20 = vmul.f32 %v1516_v26, %v2841_v44 }
 0x61d   :  { %v1733_v25 = vadd.f32 %v3089_v11, %v1683_v51  ;;  %v1686_v36 = vadd.f32 %v2261_v53, %v1567_v31 }
 0x61e   :  { %v1731_v56 = vadd.f32 %v3089_v11, %v1675_v55  ;;  %v1678_v57 = vadd.f32 %v1677_v34, %v1565_v20 }
 0x61f   :  { %1749 = vst [vmem:[#allocation13 + $0x30] sm:$0xff] %v1733_v25  ;;  %v1734_v45 = vadd.f32 %v3089_v11, %v1686_v36 }
 0x620   :  { %1747 = vst [vmem:[#allocation13 + $0x20] sm:$0xff] %v1731_v56  ;;  %v1732_v43 = vadd.f32 %v3089_v11, %v1678_v57  ;;  %v2232_v27 = vpop.f32.mrb[56].mxu1 }
 0x621   :  { %1750 = vst [vmem:[#allocation13 + $0x38] sm:$0xff] %v1734_v45  ;;  %v1529_v12 = vpop.f32.mrb[57].mxu1  ;;  %v1570_v62 = vmul.f32 %v2232_v27, %v2869_v22 }
 0x622   :  { %1748 = vst [vmem:[#allocation13 + $0x28] sm:$0xff] %v1732_v43  ;;  %v2233_v49 = vpop.f32.mrb[58].mxu1  ;;  %v1568_v3 = vmul.f32 %v1529_v12, %v2857_v60 }
 0x623   :  { %v1532_v28 = vpop.f32.mrb[59].mxu1  ;;  %v1571_v29 = vmul.f32 %v2233_v49, %v2875_v52 }
 0x624   :  { %v1569_v50 = vmul.f32 %v1532_v28, %v2861_v0 }
 0x628   :  { %v2236_v46 = vpop.f32.mrb[60].mxu1 }
 0x629   :  { %v1545_v44 = vpop.f32.mrb[61].mxu1  ;;  %v1574_v52 = vmul.f32 %v2236_v46, %v2901_v32 }
 0x62a   :  { %v2237_v8 = vpop.f32.mrb[62].mxu1  ;;  %v1572_v0 = vmul.f32 %v1545_v44, %v2884_v61 }
 0x62b   :  { %v1548_v58 = vpop.f32.mrb[63].mxu1  ;;  %v1575_v5 = vmul.f32 %v2237_v8, %v2905_v54 }
 0x62c   :  { %v1573_v15 = vmul.f32 %v1548_v58, %v2891_v7 }
 0x630   :  { %v2264_v13 = vpop.f32.mrb[64].mxu1 }
 0x631   :  { %v1699_v19 = vadd.f32 %v2264_v13, %v1570_v62  ;;  %v1690_v63 = vpop.f32.mrb[65].mxu1 }
 0x632   :  { %v1691_v47 = vadd.f32 %v1690_v63, %v1568_v3  ;;  %v2265_v1 = vpop.f32.mrb[66].mxu1 }
 0x633   :  { %v1737_v21 = vadd.f32 %v3089_v11, %v1699_v19  ;;  %v1702_v14 = vadd.f32 %v2265_v1, %v1571_v29  ;;  %v1693_v30 = vpop.f32.mrb[67].mxu1 }
 0x634   :  { %v1735_v33 = vadd.f32 %v3089_v11, %v1691_v47  ;;  %v1694_v53 = vadd.f32 %v1693_v30, %v1569_v50 }
 0x635   :  { %1753 = vst [vmem:[#allocation13 + $0x50] sm:$0xff] %v1737_v21  ;;  %v1738_v22 = vadd.f32 %v3089_v11, %v1702_v14 }
 0x636   :  { %1751 = vst [vmem:[#allocation13 + $0x40] sm:$0xff] %v1735_v33  ;;  %v1736_v60 = vadd.f32 %v3089_v11, %v1694_v53 }
 0x637   :  { %1754 = vst [vmem:[#allocation13 + $0x58] sm:$0xff] %v1738_v22 }
 0x638   :  { %1752 = vst [vmem:[#allocation13 + $0x48] sm:$0xff] %v1736_v60  ;;  %v2268_v34 = vpop.f32.mrb[68].mxu1 }
 0x639   :  { %v1715_v6 = vadd.f32 %v2268_v34, %v1574_v52  ;;  %v1706_v10 = vpop.f32.mrb[69].mxu1 }
 0x63a   :  { %v1707_v16 = vadd.f32 %v1706_v10, %v1572_v0  ;;  %v2269_v17 = vpop.f32.mrb[70].mxu1 }
 0x63b   :  { %v1741_v18 = vadd.f32 %v3089_v11, %v1715_v6  ;;  %v1718_v24 = vadd.f32 %v2269_v17, %v1575_v5  ;;  %v1709_v59 = vpop.f32.mrb[71].mxu1 }
 0x63c   :  { %v1739_v32 = vadd.f32 %v3089_v11, %v1707_v16  ;;  %v1710_v48 = vadd.f32 %v1709_v59, %v1573_v15 }
 0x63d   :  { %1757 = vst [vmem:[#allocation13 + $0x70] sm:$0xff] %v1741_v18  ;;  %v1742_v61 = vadd.f32 %v3089_v11, %v1718_v24 }
 0x63e   :  { %1755 = vst [vmem:[#allocation13 + $0x60] sm:$0xff] %v1739_v32  ;;  %v1740_v54 = vadd.f32 %v3089_v11, %v1710_v48 }
 0x63f   :  { %1758 = vst [vmem:[#allocation13 + $0x78] sm:$0xff] %v1742_v61 }
 0x640   :  { %1756 = vst [vmem:[#allocation13 + $0x68] sm:$0xff] %v1740_v54 }
 0x641   :  { %2499 = shalt.err (!%p2496_p10)
}
 0x642   :  { %s2500_s27 = scalar_lea.hbm %s3149_s12, 2048 }
 0x643   :  { %p2501_p11 = scmp.ne.s32.totalorder %s3149_s12, %s2500_s27  ;;  %p2504_p12 = scmp.lt.u32.totalorder %s2500_s27, %s3149_s12 }
 0x645   :  { %p2506_p13 = pnand %p2504_p12, %p2501_p11 }
 0x647   :  { %2509 = shalt.err (!%p2506_p13)
}
 0x648   :  { %1770 = dma.vmem_to_hbm [thread:$0]  %s1765_s26, 2048, %s3149_s12, [#allocation4], %s2525_s7, %s2525_s7, %s2526_s18  }
 0x649   :  { %2518 = dma.done.wait [#allocation4], 2048  }
 0x64a   :  { %2519 = vsyncadd [#allocation4], 4294965248 }
 0x64b   :  { %1774 = vsyncpa [#allocation3], 1 }
 0x64c   :  { %1775 = vsyncpa [#allocation6], 1 }
 0x64d   :  { %1776 = vsyncpa [#allocation9], 1 }
 0x64e   :  { %1777 = vsyncpa [#allocation12], 1 }
 0x64f   :  { %1778 = vsyncpa [#allocation4], 1 }

</bundles_post_ra>
